<compile_context>
chip_gen: v7x
topology: tpu7x:2x2x1
jax: 0.10.0
libtpu: 0.0.40
codegen_flags: <defaults>
</compile_context>

<pallas_src>
import functools
import math

import jax
import jax.numpy as jnp
from jax.experimental import pallas as pl
from jax.experimental.pallas import tpu as pltpu  # noqa: F401

# -----------------------------------------------------------------------------
# Config (small, synthetic BERT)
# -----------------------------------------------------------------------------
VOCAB = 50
TYPE_VOCAB = 2
MAX_POS = 64
HIDDEN = 32
N_HEADS = 2
HEAD_DIM = HIDDEN // N_HEADS
FFN = 4 * HIDDEN          # 128
N_LAYERS = 2
LN_EPS = 1e-12
BATCH = 2
SEQ = 8
LANES = 128


# -----------------------------------------------------------------------------
# In-kernel helpers (pure jnp on values already resident in registers/VMEM)
# -----------------------------------------------------------------------------
def _ln(x, g, b, eps=LN_EPS):
    mu = jnp.mean(x, axis=-1, keepdims=True)
    xc = x - mu
    var = jnp.mean(xc * xc, axis=-1, keepdims=True)
    return xc * jax.lax.rsqrt(var + eps) * g + b


def _gelu(x):
    # tanh-approx GELU ("gelu_new").
    # TODO(synk): HF BERT default is the erf-form gelu; tiny numeric mismatch.
    return 0.5 * x * (1.0 + jnp.tanh(
        0.7978845608028654 * (x + 0.044715 * x * x * x)))


# -----------------------------------------------------------------------------
# Fused kernel: emb-LN -> N transformer layers (block-diag attention) -> LSTM
# -----------------------------------------------------------------------------
def _bert_qpp_kernel(emb_ref, bias_ref, w_ref, v_ref, out_ref, *,
                     batch, seq, hidden, n_heads, n_layers, ffn):
    head_dim = hidden // n_heads
    scale = 1.0 / math.sqrt(head_dim)
    layer_w_rows = 3 * hidden + ffn                     # rows per layer in w_ref

    def wmat(r, rows, cols):                            # bf16 matmul weight
        return w_ref[r:r + rows, 0:cols]

    def vrow(r, cols):                                  # (1, cols) f32 vector
        return v_ref[r:r + 1, 0:cols]

    # ---- embedding layernorm (f32) ----
    x = _ln(emb_ref[...], vrow(0, hidden), vrow(1, hidden))         # (B*S, H)
    attn_bias = bias_ref[...]                                       # (B*NH*S, B*NH*S)

    # ---- transformer layers (static, fully unrolled) ----
    for l in range(n_layers):
        wbase = l * layer_w_rows
        vbase = 2 + l * 8

        # fused Q/K/V projection: (B*S, 3H), bf16 MXU, f32 accum
        qkv = jnp.dot(x.astype(jnp.bfloat16), wmat(wbase, hidden, 3 * hidden),
                      preferred_element_type=jnp.float32) + vrow(vbase, 3 * hidden)

        # stack the (batch, head) blocks along sublanes -> block-diag attention
        def stack(col0):
            return jnp.concatenate(
                [qkv[b * seq:(b + 1) * seq,
                     col0 + h * head_dim:col0 + (h + 1) * head_dim]
                 for b in range(batch) for h in range(n_heads)], axis=0)

        qs = stack(0).astype(jnp.bfloat16)              # (B*NH*S, Hd)
        ks = stack(hidden).astype(jnp.bfloat16)
        vs = stack(2 * hidden).astype(jnp.bfloat16)

        # one score matmul for all (batch, head) blocks; contract last dims
        s = jax.lax.dot_general(qs, ks, (((1,), (1,)), ((), ())),
                                preferred_element_type=jnp.float32)
        s = s * scale + attn_bias
        s = s - jnp.max(s, axis=-1, keepdims=True)
        p = jnp.exp(s)
        p = p * pl.reciprocal(jnp.sum(p, axis=-1, keepdims=True), approx=True)

        # one PV matmul for all blocks
        ctx_s = jnp.dot(p.astype(jnp.bfloat16), vs,
                        preferred_element_type=jnp.float32)         # (B*NH*S, Hd)

        # un-stack back to (B*S, H)
        ctx = jnp.concatenate(
            [jnp.concatenate(
                [ctx_s[(b * n_heads + h) * seq:(b * n_heads + h + 1) * seq, :]
                 for b in range(batch)], axis=0)
             for h in range(n_heads)], axis=1)

        # attention output projection + residual + LN (fused epilogue)
        attn = jnp.dot(ctx.astype(jnp.bfloat16),
                       wmat(wbase + hidden, hidden, hidden),
                       preferred_element_type=jnp.float32) + vrow(vbase + 1, hidden)
        x = _ln(x + attn, vrow(vbase + 2, hidden), vrow(vbase + 3, hidden))

        # FFN + residual + LN (fused epilogue)
        h1 = _gelu(jnp.dot(x.astype(jnp.bfloat16),
                           wmat(wbase + 2 * hidden, hidden, ffn),
                           preferred_element_type=jnp.float32) + vrow(vbase + 4, ffn))
        ffo = jnp.dot(h1.astype(jnp.bfloat16),
                      wmat(wbase + 3 * hidden, ffn, hidden),
                      preferred_element_type=jnp.float32) + vrow(vbase + 5, hidden)
        x = _ln(x + ffo, vrow(vbase + 6, hidden), vrow(vbase + 7, hidden))

    # ---- LSTM over the token sequence (time = seq, batch = batch) ----
    lstm_base = n_layers * layer_w_rows
    wih = wmat(lstm_base, hidden, 4 * hidden)            # (H, 4H) bf16
    whh = wmat(lstm_base + hidden, hidden, 4 * hidden)   # (H, 4H) bf16
    b_lstm = vrow(2 + 8 * n_layers, 4 * hidden)          # (1, 4H) f32

    # input projection for ALL tokens at once (hoisted out of the time loop)
    gates_x = jnp.dot(x.astype(jnp.bfloat16), wih,
                      preferred_element_type=jnp.float32) + b_lstm   # (B*S, 4H)

    # per-step (B, 4H) input rows, pre-sliced OUTSIDE the serial recurrence
    gx = [jnp.concatenate(
              [gates_x[b * seq + t:b * seq + t + 1, :] for b in range(batch)],
              axis=0) for t in range(seq)]

    h_t = jnp.zeros((batch, hidden), jnp.float32)
    c_t = jnp.zeros((batch, hidden), jnp.float32)
    hs = []
    for t in range(seq):
        gates = gx[t] + jnp.dot(h_t.astype(jnp.bfloat16), whh,
                                preferred_element_type=jnp.float32)  # (B, 4H)
        sg = jax.nn.sigmoid(gates)           # one full-width lane-dense sigmoid
        i_g = sg[:, 0 * hidden:1 * hidden]
        f_g = sg[:, 1 * hidden:2 * hidden]
        o_g = sg[:, 3 * hidden:4 * hidden]
        g_g = jnp.tanh(gates[:, 2 * hidden:3 * hidden])
        c_t = f_g * c_t + i_g * g_g
        h_t = o_g * jnp.tanh(c_t)
        hs.append(h_t)

    # single lane-dense store: (B, S*H) = (2, 256)
    out_ref[...] = jnp.concatenate(hs, axis=1).astype(out_ref.dtype)


# -----------------------------------------------------------------------------
# Parameter init (deterministic, synthetic)
# -----------------------------------------------------------------------------
def init_params(key):
    def normal(key, shape, scale=0.02):
        return scale * jax.random.normal(key, shape, dtype=jnp.float32)

    keys = iter(jax.random.split(key, 8 + N_LAYERS * 12 + 4))
    p = {
        "word_emb": normal(next(keys), (VOCAB, HIDDEN)),
        "pos_emb": normal(next(keys), (MAX_POS, HIDDEN)),
        "type_emb": normal(next(keys), (TYPE_VOCAB, HIDDEN)),
        "emb_ln_g": jnp.ones((HIDDEN,), jnp.float32),
        "emb_ln_b": jnp.zeros((HIDDEN,), jnp.float32),
        "layers": [],
    }
    for _ in range(N_LAYERS):
        layer = {
            "wq": normal(next(keys), (HIDDEN, HIDDEN)),
            "bq": jnp.zeros((HIDDEN,), jnp.float32),
            "wk": normal(next(keys), (HIDDEN, HIDDEN)),
            "bk": jnp.zeros((HIDDEN,), jnp.float32),
            "wv": normal(next(keys), (HIDDEN, HIDDEN)),
            "bv": jnp.zeros((HIDDEN,), jnp.float32),
            "wo": normal(next(keys), (HIDDEN, HIDDEN)),
            "bo": jnp.zeros((HIDDEN,), jnp.float32),
            "ln1_g": jnp.ones((HIDDEN,), jnp.float32),
            "ln1_b": jnp.zeros((HIDDEN,), jnp.float32),
            "w1": normal(next(keys), (HIDDEN, FFN)),
            "b1": jnp.zeros((FFN,), jnp.float32),
            "w2": normal(next(keys), (FFN, HIDDEN)),
            "b2": jnp.zeros((HIDDEN,), jnp.float32),
            "ln2_g": jnp.ones((HIDDEN,), jnp.float32),
            "ln2_b": jnp.zeros((HIDDEN,), jnp.float32),
        }
        p["layers"].append(layer)
    k = 1.0 / math.sqrt(HIDDEN)
    p["lstm_w_ih"] = jax.random.uniform(next(keys), (4 * HIDDEN, HIDDEN),
                                        minval=-k, maxval=k, dtype=jnp.float32)
    p["lstm_w_hh"] = jax.random.uniform(next(keys), (4 * HIDDEN, HIDDEN),
                                        minval=-k, maxval=k, dtype=jnp.float32)
    p["lstm_b_ih"] = jax.random.uniform(next(keys), (4 * HIDDEN,),
                                        minval=-k, maxval=k, dtype=jnp.float32)
    p["lstm_b_hh"] = jax.random.uniform(next(keys), (4 * HIDDEN,),
                                        minval=-k, maxval=k, dtype=jnp.float32)
    return p


# -----------------------------------------------------------------------------
# One-time repack: everything into two lane-dense slabs
#   w_slab: (512, 128) bf16 -- all matmul weights (fused QKV, torch->matmul LSTM)
#   v_slab: (19, 128)  f32  -- all biases / LayerNorm params, one row each
# -----------------------------------------------------------------------------
def _pad_lanes(a, lanes=LANES):
    r, c = a.shape
    return a if c == lanes else jnp.pad(a, ((0, 0), (0, lanes - c)))


def prepare_kernel_weights(params):
    wmats = []
    vrows = [params["emb_ln_g"].reshape(1, -1), params["emb_ln_b"].reshape(1, -1)]
    for lyr in params["layers"]:
        wqkv = jnp.concatenate([lyr["wq"], lyr["wk"], lyr["wv"]], axis=1)   # (H, 3H)
        wmats += [wqkv, lyr["wo"], lyr["w1"], lyr["w2"]]
        vrows += [
            jnp.concatenate([lyr["bq"], lyr["bk"], lyr["bv"]]).reshape(1, -1),
            lyr["bo"].reshape(1, -1),
            lyr["ln1_g"].reshape(1, -1), lyr["ln1_b"].reshape(1, -1),
            lyr["b1"].reshape(1, -1), lyr["b2"].reshape(1, -1),
            lyr["ln2_g"].reshape(1, -1), lyr["ln2_b"].reshape(1, -1),
        ]
    wmats += [params["lstm_w_ih"].T, params["lstm_w_hh"].T]                 # (H, 4H)
    vrows += [(params["lstm_b_ih"] + params["lstm_b_hh"]).reshape(1, -1)]

    w_slab = jnp.concatenate([_pad_lanes(m) for m in wmats], axis=0).astype(jnp.bfloat16)
    v_slab = jnp.concatenate([_pad_lanes(v) for v in vrows], axis=0).astype(jnp.float32)
    return jax.device_put(w_slab), jax.device_put(v_slab)


# -----------------------------------------------------------------------------
# Forward pass: embedding gather + mask build in XLA, everything else in ONE
# Pallas kernel.
# -----------------------------------------------------------------------------
def _build_attn_bias(attention_mask, B, S):
    """(B*NH*S, B*NH*S) block-diagonal + key-padding additive bias."""
    n = B * N_HEADS * S
    key_bias = (1.0 - attention_mask.astype(jnp.float32)) * -1e9     # (B, S)
    idx = jnp.arange(n)
    blk = idx // S                                                    # block = b*NH + h
    col_bias = key_bias[blk // N_HEADS, idx % S]                      # (n,)
    block_mask = jnp.where(blk[:, None] == blk[None, :], 0.0, -1e9)   # (n, n)
    return block_mask + col_bias[None, :]


@jax.jit
def bert_qpp_forward(params, w_slab, v_slab, input_ids, attention_mask,
                     token_type_ids):
    B, S = input_ids.shape

    # embeddings (gather stays in XLA; gather has no clean tiny-Pallas win)
    pos_ids = jnp.arange(S)
    emb = (jnp.take(params["word_emb"], input_ids, axis=0)
           + jnp.take(params["pos_emb"], pos_ids, axis=0)[None, :, :]
           + jnp.take(params["type_emb"], token_type_ids, axis=0))    # (B, S, H)
    emb2d = emb.reshape(B * S, HIDDEN).astype(jnp.float32)

    attn_bias = _build_attn_bias(attention_mask, B, S)                # (32, 32)

    kernel = functools.partial(_bert_qpp_kernel, batch=B, seq=S, hidden=HIDDEN,
                               n_heads=N_HEADS, n_layers=N_LAYERS, ffn=FFN)
    out = pl.pallas_call(
        kernel,
        out_shape=jax.ShapeDtypeStruct((B, S * HIDDEN), jnp.float32),
    )(emb2d, attn_bias, w_slab, v_slab)                               # (B, S*H)

    # mirror `res.unsqueeze(1)` shape convention: (B, 1, S, H)
    return out.reshape(B, S, HIDDEN)[:, None, :, :]


# -----------------------------------------------------------------------------
# Main
# -----------------------------------------------------------------------------
if __name__ == "__main__":
    key = jax.random.PRNGKey(0)
    pkey, ikey, tkey = jax.random.split(key, 3)

    params = init_params(pkey)
    w_slab, v_slab = prepare_kernel_weights(params)   # one-time repack

    input_ids = jax.random.randint(ikey, (BATCH, SEQ), 0, VOCAB, dtype=jnp.int32)
    token_type_ids = jax.random.randint(tkey, (BATCH, SEQ), 0, TYPE_VOCAB,
                                        dtype=jnp.int32)
    attention_mask = jnp.ones((BATCH, SEQ), jnp.int32)
    attention_mask = attention_mask.at[1, -2:].set(0)   # pad last 2 tokens of ex 1

    out = bert_qpp_forward(params, w_slab, v_slab, input_ids, attention_mask,
                           token_type_ids)
    out = jax.block_until_ready(out)
    assert out.shape == (BATCH, 1, SEQ, HIDDEN), out.shape
    assert jnp.all(jnp.isfinite(out))
    print("KERNEL_OK")
</pallas_src>

<mosaic_0001>
module attributes {stable_mosaic.version = 11 : i64} {
  func.func @_bert_qpp_kernel(%arg0: memref<16x32xf32, #tpu.memory_space<vmem>>, %arg1: memref<32x32xf32, #tpu.memory_space<vmem>>, %arg2: memref<512x128xbf16, #tpu.memory_space<vmem>>, %arg3: memref<19x128xf32, #tpu.memory_space<vmem>>, %arg4: memref<2x256xf32, #tpu.memory_space<vmem>>) attributes {dimension_semantics = [], scalar_prefetch = 0 : i64, scratch_operands = 0 : i64, tpu.core_type = #tpu.core_type<tc>} {
    %c0 = arith.constant 0 : index
    %c0_0 = arith.constant 0 : index
    %0 = vector.load %arg0[%c0, %c0_0] : memref<16x32xf32, #tpu.memory_space<vmem>>, vector<16x32xf32>
    %c0_1 = arith.constant 0 : index
    %c0_2 = arith.constant 0 : index
    %1 = vector.load %arg3[%c0_1, %c0_2] : memref<19x128xf32, #tpu.memory_space<vmem>>, vector<1x32xf32>
    %c1 = arith.constant 1 : index
    %c0_3 = arith.constant 0 : index
    %2 = vector.load %arg3[%c1, %c0_3] : memref<19x128xf32, #tpu.memory_space<vmem>>, vector<1x32xf32>
    %cst = arith.constant dense<0.000000e+00> : vector<16xf32>
    %3 = vector.multi_reduction <add>, %0, %cst [1] : vector<16x32xf32> to vector<16xf32>
    %4 = vector.shape_cast %3 : vector<16xf32> to vector<16x1xf32>
    %cst_4 = arith.constant 3.200000e+01 : f32
    %5 = vector.broadcast %cst_4 : f32 to vector<16x1xf32>
    %6 = arith.divf %4, %5 : vector<16x1xf32>
    %7 = vector.broadcast %6 : vector<16x1xf32> to vector<16x32xf32>
    %8 = arith.subf %0, %7 : vector<16x32xf32>
    %9 = arith.mulf %8, %8 : vector<16x32xf32>
    %cst_5 = arith.constant dense<0.000000e+00> : vector<16xf32>
    %10 = vector.multi_reduction <add>, %9, %cst_5 [1] : vector<16x32xf32> to vector<16xf32>
    %11 = vector.shape_cast %10 : vector<16xf32> to vector<16x1xf32>
    %cst_6 = arith.constant 3.200000e+01 : f32
    %12 = vector.broadcast %cst_6 : f32 to vector<16x1xf32>
    %13 = arith.divf %11, %12 : vector<16x1xf32>
    %cst_7 = arith.constant 9.99999996E-13 : f32
    %14 = vector.broadcast %cst_7 : f32 to vector<16x1xf32>
    %15 = arith.addf %13, %14 : vector<16x1xf32>
    %16 = math.rsqrt %15 : vector<16x1xf32>
    %17 = vector.broadcast %16 : vector<16x1xf32> to vector<16x32xf32>
    %18 = arith.mulf %8, %17 : vector<16x32xf32>
    %19 = vector.broadcast %1 : vector<1x32xf32> to vector<16x32xf32>
    %20 = arith.mulf %18, %19 : vector<16x32xf32>
    %21 = vector.broadcast %2 : vector<1x32xf32> to vector<16x32xf32>
    %22 = arith.addf %20, %21 : vector<16x32xf32>
    %c0_8 = arith.constant 0 : index
    %c0_9 = arith.constant 0 : index
    %23 = vector.load %arg1[%c0_8, %c0_9] : memref<32x32xf32, #tpu.memory_space<vmem>>, vector<32x32xf32>
    %24 = arith.truncf %22 : vector<16x32xf32> to vector<16x32xbf16>
    %c0_10 = arith.constant 0 : index
    %c0_11 = arith.constant 0 : index
    %25 = vector.load %arg2[%c0_10, %c0_11] : memref<512x128xbf16, #tpu.memory_space<vmem>>, vector<32x96xbf16>
    %cst_12 = arith.constant dense<0.000000e+00> : vector<16x96xf32>
    %26 = tpu.matmul %24, %25, %cst_12 {dimension_numbers = #tpu.dot_dimension_numbers<[1], [0], [0], [1], [0, 0, 1, 1], [], []>} : vector<16x32xbf16>, vector<32x96xbf16>, vector<16x96xf32> -> vector<16x96xf32>
    %c2 = arith.constant 2 : index
    %c0_13 = arith.constant 0 : index
    %27 = vector.load %arg3[%c2, %c0_13] : memref<19x128xf32, #tpu.memory_space<vmem>>, vector<1x96xf32>
    %28 = vector.broadcast %27 : vector<1x96xf32> to vector<16x96xf32>
    %29 = arith.addf %26, %28 : vector<16x96xf32>
    %30 = vector.extract_strided_slice %29 {offsets = [0, 0], sizes = [8, 16], strides = [1, 1]} : vector<16x96xf32> to vector<8x16xf32>
    %31 = vector.extract_strided_slice %29 {offsets = [0, 16], sizes = [8, 16], strides = [1, 1]} : vector<16x96xf32> to vector<8x16xf32>
    %32 = vector.extract_strided_slice %29 {offsets = [8, 0], sizes = [8, 16], strides = [1, 1]} : vector<16x96xf32> to vector<8x16xf32>
    %33 = vector.extract_strided_slice %29 {offsets = [8, 16], sizes = [8, 16], strides = [1, 1]} : vector<16x96xf32> to vector<8x16xf32>
    %34 = tpu.concatenate %30, %31, %32, %33 in 0 : vector<8x16xf32>, vector<8x16xf32>, vector<8x16xf32>, vector<8x16xf32> -> vector<32x16xf32>
    %35 = arith.truncf %34 : vector<32x16xf32> to vector<32x16xbf16>
    %36 = vector.extract_strided_slice %29 {offsets = [0, 32], sizes = [8, 16], strides = [1, 1]} : vector<16x96xf32> to vector<8x16xf32>
    %37 = vector.extract_strided_slice %29 {offsets = [0, 48], sizes = [8, 16], strides = [1, 1]} : vector<16x96xf32> to vector<8x16xf32>
    %38 = vector.extract_strided_slice %29 {offsets = [8, 32], sizes = [8, 16], strides = [1, 1]} : vector<16x96xf32> to vector<8x16xf32>
    %39 = vector.extract_strided_slice %29 {offsets = [8, 48], sizes = [8, 16], strides = [1, 1]} : vector<16x96xf32> to vector<8x16xf32>
    %40 = tpu.concatenate %36, %37, %38, %39 in 0 : vector<8x16xf32>, vector<8x16xf32>, vector<8x16xf32>, vector<8x16xf32> -> vector<32x16xf32>
    %41 = arith.truncf %40 : vector<32x16xf32> to vector<32x16xbf16>
    %42 = vector.extract_strided_slice %29 {offsets = [0, 64], sizes = [8, 16], strides = [1, 1]} : vector<16x96xf32> to vector<8x16xf32>
    %43 = vector.extract_strided_slice %29 {offsets = [0, 80], sizes = [8, 16], strides = [1, 1]} : vector<16x96xf32> to vector<8x16xf32>
    %44 = vector.extract_strided_slice %29 {offsets = [8, 64], sizes = [8, 16], strides = [1, 1]} : vector<16x96xf32> to vector<8x16xf32>
    %45 = vector.extract_strided_slice %29 {offsets = [8, 80], sizes = [8, 16], strides = [1, 1]} : vector<16x96xf32> to vector<8x16xf32>
    %46 = tpu.concatenate %42, %43, %44, %45 in 0 : vector<8x16xf32>, vector<8x16xf32>, vector<8x16xf32>, vector<8x16xf32> -> vector<32x16xf32>
    %47 = arith.truncf %46 : vector<32x16xf32> to vector<32x16xbf16>
    %cst_14 = arith.constant dense<0.000000e+00> : vector<32x32xf32>
    %48 = tpu.matmul %35, %41, %cst_14 {dimension_numbers = #tpu.dot_dimension_numbers<[1], [1], [0], [0], [0, 0, 1, 0], [], []>} : vector<32x16xbf16>, vector<32x16xbf16>, vector<32x32xf32> -> vector<32x32xf32>
    %cst_15 = arith.constant 2.500000e-01 : f32
    %49 = vector.broadcast %cst_15 : f32 to vector<32x32xf32>
    %50 = arith.mulf %48, %49 : vector<32x32xf32>
    %51 = arith.addf %50, %23 : vector<32x32xf32>
    %cst_16 = arith.constant dense<0xFF800000> : vector<32xf32>
    %52 = vector.multi_reduction <maximumf>, %51, %cst_16 [1] : vector<32x32xf32> to vector<32xf32>
    %53 = vector.shape_cast %52 : vector<32xf32> to vector<32x1xf32>
    %54 = vector.broadcast %53 : vector<32x1xf32> to vector<32x32xf32>
    %55 = arith.subf %51, %54 : vector<32x32xf32>
    %56 = math.exp %55 : vector<32x32xf32>
    %cst_17 = arith.constant dense<0.000000e+00> : vector<32xf32>
    %57 = vector.multi_reduction <add>, %56, %cst_17 [1] : vector<32x32xf32> to vector<32xf32>
    %58 = vector.shape_cast %57 : vector<32xf32> to vector<32x1xf32>
    %59 = tpu.reciprocal %58 {approx = true} : vector<32x1xf32> -> vector<32x1xf32>
    %60 = vector.broadcast %59 : vector<32x1xf32> to vector<32x32xf32>
    %61 = arith.mulf %56, %60 : vector<32x32xf32>
    %62 = arith.truncf %61 : vector<32x32xf32> to vector<32x32xbf16>
    %cst_18 = arith.constant dense<0.000000e+00> : vector<32x16xf32>
    %63 = tpu.matmul %62, %47, %cst_18 {dimension_numbers = #tpu.dot_dimension_numbers<[1], [0], [0], [1], [0, 0, 1, 1], [], []>} : vector<32x32xbf16>, vector<32x16xbf16>, vector<32x16xf32> -> vector<32x16xf32>
    %64 = vector.extract_strided_slice %63 {offsets = [0, 0], sizes = [8, 16], strides = [1, 1]} : vector<32x16xf32> to vector<8x16xf32>
    %65 = vector.extract_strided_slice %63 {offsets = [16, 0], sizes = [8, 16], strides = [1, 1]} : vector<32x16xf32> to vector<8x16xf32>
    %66 = tpu.concatenate %64, %65 in 0 : vector<8x16xf32>, vector<8x16xf32> -> vector<16x16xf32>
    %67 = vector.extract_strided_slice %63 {offsets = [8, 0], sizes = [8, 16], strides = [1, 1]} : vector<32x16xf32> to vector<8x16xf32>
    %68 = vector.extract_strided_slice %63 {offsets = [24, 0], sizes = [8, 16], strides = [1, 1]} : vector<32x16xf32> to vector<8x16xf32>
    %69 = tpu.concatenate %67, %68 in 0 : vector<8x16xf32>, vector<8x16xf32> -> vector<16x16xf32>
    %70 = tpu.concatenate %66, %69 in 1 : vector<16x16xf32>, vector<16x16xf32> -> vector<16x32xf32>
    %71 = arith.truncf %70 : vector<16x32xf32> to vector<16x32xbf16>
    %c32 = arith.constant 32 : index
    %c0_19 = arith.constant 0 : index
    %72 = vector.load %arg2[%c32, %c0_19] : memref<512x128xbf16, #tpu.memory_space<vmem>>, vector<32x32xbf16>
    %cst_20 = arith.constant dense<0.000000e+00> : vector<16x32xf32>
    %73 = tpu.matmul %71, %72, %cst_20 {dimension_numbers = #tpu.dot_dimension_numbers<[1], [0], [0], [1], [0, 0, 1, 1], [], []>} : vector<16x32xbf16>, vector<32x32xbf16>, vector<16x32xf32> -> vector<16x32xf32>
    %c3 = arith.constant 3 : index
    %c0_21 = arith.constant 0 : index
    %74 = vector.load %arg3[%c3, %c0_21] : memref<19x128xf32, #tpu.memory_space<vmem>>, vector<1x32xf32>
    %75 = vector.broadcast %74 : vector<1x32xf32> to vector<16x32xf32>
    %76 = arith.addf %73, %75 : vector<16x32xf32>
    %77 = arith.addf %22, %76 : vector<16x32xf32>
    %c4 = arith.constant 4 : index
    %c0_22 = arith.constant 0 : index
    %78 = vector.load %arg3[%c4, %c0_22] : memref<19x128xf32, #tpu.memory_space<vmem>>, vector<1x32xf32>
    %c5 = arith.constant 5 : index
    %c0_23 = arith.constant 0 : index
    %79 = vector.load %arg3[%c5, %c0_23] : memref<19x128xf32, #tpu.memory_space<vmem>>, vector<1x32xf32>
    %cst_24 = arith.constant dense<0.000000e+00> : vector<16xf32>
    %80 = vector.multi_reduction <add>, %77, %cst_24 [1] : vector<16x32xf32> to vector<16xf32>
    %81 = vector.shape_cast %80 : vector<16xf32> to vector<16x1xf32>
    %cst_25 = arith.constant 3.200000e+01 : f32
    %82 = vector.broadcast %cst_25 : f32 to vector<16x1xf32>
    %83 = arith.divf %81, %82 : vector<16x1xf32>
    %84 = vector.broadcast %83 : vector<16x1xf32> to vector<16x32xf32>
    %85 = arith.subf %77, %84 : vector<16x32xf32>
    %86 = arith.mulf %85, %85 : vector<16x32xf32>
    %cst_26 = arith.constant dense<0.000000e+00> : vector<16xf32>
    %87 = vector.multi_reduction <add>, %86, %cst_26 [1] : vector<16x32xf32> to vector<16xf32>
    %88 = vector.shape_cast %87 : vector<16xf32> to vector<16x1xf32>
    %cst_27 = arith.constant 3.200000e+01 : f32
    %89 = vector.broadcast %cst_27 : f32 to vector<16x1xf32>
    %90 = arith.divf %88, %89 : vector<16x1xf32>
    %cst_28 = arith.constant 9.99999996E-13 : f32
    %91 = vector.broadcast %cst_28 : f32 to vector<16x1xf32>
    %92 = arith.addf %90, %91 : vector<16x1xf32>
    %93 = math.rsqrt %92 : vector<16x1xf32>
    %94 = vector.broadcast %93 : vector<16x1xf32> to vector<16x32xf32>
    %95 = arith.mulf %85, %94 : vector<16x32xf32>
    %96 = vector.broadcast %78 : vector<1x32xf32> to vector<16x32xf32>
    %97 = arith.mulf %95, %96 : vector<16x32xf32>
    %98 = vector.broadcast %79 : vector<1x32xf32> to vector<16x32xf32>
    %99 = arith.addf %97, %98 : vector<16x32xf32>
    %100 = arith.truncf %99 : vector<16x32xf32> to vector<16x32xbf16>
    %c64 = arith.constant 64 : index
    %c0_29 = arith.constant 0 : index
    %101 = vector.load %arg2[%c64, %c0_29] : memref<512x128xbf16, #tpu.memory_space<vmem>>, vector<32x128xbf16>
    %cst_30 = arith.constant dense<0.000000e+00> : vector<16x128xf32>
    %102 = tpu.matmul %100, %101, %cst_30 {dimension_numbers = #tpu.dot_dimension_numbers<[1], [0], [0], [1], [0, 0, 1, 1], [], []>} : vector<16x32xbf16>, vector<32x128xbf16>, vector<16x128xf32> -> vector<16x128xf32>
    %c6 = arith.constant 6 : index
    %c0_31 = arith.constant 0 : index
    %103 = vector.load %arg3[%c6, %c0_31] : memref<19x128xf32, #tpu.memory_space<vmem>>, vector<1x128xf32>
    %104 = vector.broadcast %103 : vector<1x128xf32> to vector<16x128xf32>
    %105 = arith.addf %102, %104 : vector<16x128xf32>
    %cst_32 = arith.constant 5.000000e-01 : f32
    %106 = vector.broadcast %cst_32 : f32 to vector<16x128xf32>
    %107 = arith.mulf %106, %105 : vector<16x128xf32>
    %cst_33 = arith.constant 4.471500e-02 : f32
    %108 = vector.broadcast %cst_33 : f32 to vector<16x128xf32>
    %109 = arith.mulf %108, %105 : vector<16x128xf32>
    %110 = arith.mulf %109, %105 : vector<16x128xf32>
    %111 = arith.mulf %110, %105 : vector<16x128xf32>
    %112 = arith.addf %105, %111 : vector<16x128xf32>
    %cst_34 = arith.constant 0.797884583 : f32
    %113 = vector.broadcast %cst_34 : f32 to vector<16x128xf32>
    %114 = arith.mulf %113, %112 : vector<16x128xf32>
    %115 = math.tanh %114 : vector<16x128xf32>
    %cst_35 = arith.constant 1.000000e+00 : f32
    %116 = vector.broadcast %cst_35 : f32 to vector<16x128xf32>
    %117 = arith.addf %116, %115 : vector<16x128xf32>
    %118 = arith.mulf %107, %117 : vector<16x128xf32>
    %119 = arith.truncf %118 : vector<16x128xf32> to vector<16x128xbf16>
    %c96 = arith.constant 96 : index
    %c0_36 = arith.constant 0 : index
    %120 = vector.load %arg2[%c96, %c0_36] : memref<512x128xbf16, #tpu.memory_space<vmem>>, vector<128x32xbf16>
    %cst_37 = arith.constant dense<0.000000e+00> : vector<16x32xf32>
    %121 = tpu.matmul %119, %120, %cst_37 {dimension_numbers = #tpu.dot_dimension_numbers<[1], [0], [0], [1], [0, 0, 1, 1], [], []>} : vector<16x128xbf16>, vector<128x32xbf16>, vector<16x32xf32> -> vector<16x32xf32>
    %c7 = arith.constant 7 : index
    %c0_38 = arith.constant 0 : index
    %122 = vector.load %arg3[%c7, %c0_38] : memref<19x128xf32, #tpu.memory_space<vmem>>, vector<1x32xf32>
    %123 = vector.broadcast %122 : vector<1x32xf32> to vector<16x32xf32>
    %124 = arith.addf %121, %123 : vector<16x32xf32>
    %125 = arith.addf %99, %124 : vector<16x32xf32>
    %c8 = arith.constant 8 : index
    %c0_39 = arith.constant 0 : index
    %126 = vector.load %arg3[%c8, %c0_39] : memref<19x128xf32, #tpu.memory_space<vmem>>, vector<1x32xf32>
    %c9 = arith.constant 9 : index
    %c0_40 = arith.constant 0 : index
    %127 = vector.load %arg3[%c9, %c0_40] : memref<19x128xf32, #tpu.memory_space<vmem>>, vector<1x32xf32>
    %cst_41 = arith.constant dense<0.000000e+00> : vector<16xf32>
    %128 = vector.multi_reduction <add>, %125, %cst_41 [1] : vector<16x32xf32> to vector<16xf32>
    %129 = vector.shape_cast %128 : vector<16xf32> to vector<16x1xf32>
    %cst_42 = arith.constant 3.200000e+01 : f32
    %130 = vector.broadcast %cst_42 : f32 to vector<16x1xf32>
    %131 = arith.divf %129, %130 : vector<16x1xf32>
    %132 = vector.broadcast %131 : vector<16x1xf32> to vector<16x32xf32>
    %133 = arith.subf %125, %132 : vector<16x32xf32>
    %134 = arith.mulf %133, %133 : vector<16x32xf32>
    %cst_43 = arith.constant dense<0.000000e+00> : vector<16xf32>
    %135 = vector.multi_reduction <add>, %134, %cst_43 [1] : vector<16x32xf32> to vector<16xf32>
    %136 = vector.shape_cast %135 : vector<16xf32> to vector<16x1xf32>
    %cst_44 = arith.constant 3.200000e+01 : f32
    %137 = vector.broadcast %cst_44 : f32 to vector<16x1xf32>
    %138 = arith.divf %136, %137 : vector<16x1xf32>
    %cst_45 = arith.constant 9.99999996E-13 : f32
    %139 = vector.broadcast %cst_45 : f32 to vector<16x1xf32>
    %140 = arith.addf %138, %139 : vector<16x1xf32>
    %141 = math.rsqrt %140 : vector<16x1xf32>
    %142 = vector.broadcast %141 : vector<16x1xf32> to vector<16x32xf32>
    %143 = arith.mulf %133, %142 : vector<16x32xf32>
    %144 = vector.broadcast %126 : vector<1x32xf32> to vector<16x32xf32>
    %145 = arith.mulf %143, %144 : vector<16x32xf32>
    %146 = vector.broadcast %127 : vector<1x32xf32> to vector<16x32xf32>
    %147 = arith.addf %145, %146 : vector<16x32xf32>
    %148 = arith.truncf %147 : vector<16x32xf32> to vector<16x32xbf16>
    %c224 = arith.constant 224 : index
    %c0_46 = arith.constant 0 : index
    %149 = vector.load %arg2[%c224, %c0_46] : memref<512x128xbf16, #tpu.memory_space<vmem>>, vector<32x96xbf16>
    %cst_47 = arith.constant dense<0.000000e+00> : vector<16x96xf32>
    %150 = tpu.matmul %148, %149, %cst_47 {dimension_numbers = #tpu.dot_dimension_numbers<[1], [0], [0], [1], [0, 0, 1, 1], [], []>} : vector<16x32xbf16>, vector<32x96xbf16>, vector<16x96xf32> -> vector<16x96xf32>
    %c10 = arith.constant 10 : index
    %c0_48 = arith.constant 0 : index
    %151 = vector.load %arg3[%c10, %c0_48] : memref<19x128xf32, #tpu.memory_space<vmem>>, vector<1x96xf32>
    %152 = vector.broadcast %151 : vector<1x96xf32> to vector<16x96xf32>
    %153 = arith.addf %150, %152 : vector<16x96xf32>
    %154 = vector.extract_strided_slice %153 {offsets = [0, 0], sizes = [8, 16], strides = [1, 1]} : vector<16x96xf32> to vector<8x16xf32>
    %155 = vector.extract_strided_slice %153 {offsets = [0, 16], sizes = [8, 16], strides = [1, 1]} : vector<16x96xf32> to vector<8x16xf32>
    %156 = vector.extract_strided_slice %153 {offsets = [8, 0], sizes = [8, 16], strides = [1, 1]} : vector<16x96xf32> to vector<8x16xf32>
    %157 = vector.extract_strided_slice %153 {offsets = [8, 16], sizes = [8, 16], strides = [1, 1]} : vector<16x96xf32> to vector<8x16xf32>
    %158 = tpu.concatenate %154, %155, %156, %157 in 0 : vector<8x16xf32>, vector<8x16xf32>, vector<8x16xf32>, vector<8x16xf32> -> vector<32x16xf32>
    %159 = arith.truncf %158 : vector<32x16xf32> to vector<32x16xbf16>
    %160 = vector.extract_strided_slice %153 {offsets = [0, 32], sizes = [8, 16], strides = [1, 1]} : vector<16x96xf32> to vector<8x16xf32>
    %161 = vector.extract_strided_slice %153 {offsets = [0, 48], sizes = [8, 16], strides = [1, 1]} : vector<16x96xf32> to vector<8x16xf32>
    %162 = vector.extract_strided_slice %153 {offsets = [8, 32], sizes = [8, 16], strides = [1, 1]} : vector<16x96xf32> to vector<8x16xf32>
    %163 = vector.extract_strided_slice %153 {offsets = [8, 48], sizes = [8, 16], strides = [1, 1]} : vector<16x96xf32> to vector<8x16xf32>
    %164 = tpu.concatenate %160, %161, %162, %163 in 0 : vector<8x16xf32>, vector<8x16xf32>, vector<8x16xf32>, vector<8x16xf32> -> vector<32x16xf32>
    %165 = arith.truncf %164 : vector<32x16xf32> to vector<32x16xbf16>
    %166 = vector.extract_strided_slice %153 {offsets = [0, 64], sizes = [8, 16], strides = [1, 1]} : vector<16x96xf32> to vector<8x16xf32>
    %167 = vector.extract_strided_slice %153 {offsets = [0, 80], sizes = [8, 16], strides = [1, 1]} : vector<16x96xf32> to vector<8x16xf32>
    %168 = vector.extract_strided_slice %153 {offsets = [8, 64], sizes = [8, 16], strides = [1, 1]} : vector<16x96xf32> to vector<8x16xf32>
    %169 = vector.extract_strided_slice %153 {offsets = [8, 80], sizes = [8, 16], strides = [1, 1]} : vector<16x96xf32> to vector<8x16xf32>
    %170 = tpu.concatenate %166, %167, %168, %169 in 0 : vector<8x16xf32>, vector<8x16xf32>, vector<8x16xf32>, vector<8x16xf32> -> vector<32x16xf32>
    %171 = arith.truncf %170 : vector<32x16xf32> to vector<32x16xbf16>
    %cst_49 = arith.constant dense<0.000000e+00> : vector<32x32xf32>
    %172 = tpu.matmul %159, %165, %cst_49 {dimension_numbers = #tpu.dot_dimension_numbers<[1], [1], [0], [0], [0, 0, 1, 0], [], []>} : vector<32x16xbf16>, vector<32x16xbf16>, vector<32x32xf32> -> vector<32x32xf32>
    %cst_50 = arith.constant 2.500000e-01 : f32
    %173 = vector.broadcast %cst_50 : f32 to vector<32x32xf32>
    %174 = arith.mulf %172, %173 : vector<32x32xf32>
    %175 = arith.addf %174, %23 : vector<32x32xf32>
    %cst_51 = arith.constant dense<0xFF800000> : vector<32xf32>
    %176 = vector.multi_reduction <maximumf>, %175, %cst_51 [1] : vector<32x32xf32> to vector<32xf32>
    %177 = vector.shape_cast %176 : vector<32xf32> to vector<32x1xf32>
    %178 = vector.broadcast %177 : vector<32x1xf32> to vector<32x32xf32>
    %179 = arith.subf %175, %178 : vector<32x32xf32>
    %180 = math.exp %179 : vector<32x32xf32>
    %cst_52 = arith.constant dense<0.000000e+00> : vector<32xf32>
    %181 = vector.multi_reduction <add>, %180, %cst_52 [1] : vector<32x32xf32> to vector<32xf32>
    %182 = vector.shape_cast %181 : vector<32xf32> to vector<32x1xf32>
    %183 = tpu.reciprocal %182 {approx = true} : vector<32x1xf32> -> vector<32x1xf32>
    %184 = vector.broadcast %183 : vector<32x1xf32> to vector<32x32xf32>
    %185 = arith.mulf %180, %184 : vector<32x32xf32>
    %186 = arith.truncf %185 : vector<32x32xf32> to vector<32x32xbf16>
    %cst_53 = arith.constant dense<0.000000e+00> : vector<32x16xf32>
    %187 = tpu.matmul %186, %171, %cst_53 {dimension_numbers = #tpu.dot_dimension_numbers<[1], [0], [0], [1], [0, 0, 1, 1], [], []>} : vector<32x32xbf16>, vector<32x16xbf16>, vector<32x16xf32> -> vector<32x16xf32>
    %188 = vector.extract_strided_slice %187 {offsets = [0, 0], sizes = [8, 16], strides = [1, 1]} : vector<32x16xf32> to vector<8x16xf32>
    %189 = vector.extract_strided_slice %187 {offsets = [16, 0], sizes = [8, 16], strides = [1, 1]} : vector<32x16xf32> to vector<8x16xf32>
    %190 = tpu.concatenate %188, %189 in 0 : vector<8x16xf32>, vector<8x16xf32> -> vector<16x16xf32>
    %191 = vector.extract_strided_slice %187 {offsets = [8, 0], sizes = [8, 16], strides = [1, 1]} : vector<32x16xf32> to vector<8x16xf32>
    %192 = vector.extract_strided_slice %187 {offsets = [24, 0], sizes = [8, 16], strides = [1, 1]} : vector<32x16xf32> to vector<8x16xf32>
    %193 = tpu.concatenate %191, %192 in 0 : vector<8x16xf32>, vector<8x16xf32> -> vector<16x16xf32>
    %194 = tpu.concatenate %190, %193 in 1 : vector<16x16xf32>, vector<16x16xf32> -> vector<16x32xf32>
    %195 = arith.truncf %194 : vector<16x32xf32> to vector<16x32xbf16>
    %c256 = arith.constant 256 : index
    %c0_54 = arith.constant 0 : index
    %196 = vector.load %arg2[%c256, %c0_54] : memref<512x128xbf16, #tpu.memory_space<vmem>>, vector<32x32xbf16>
    %cst_55 = arith.constant dense<0.000000e+00> : vector<16x32xf32>
    %197 = tpu.matmul %195, %196, %cst_55 {dimension_numbers = #tpu.dot_dimension_numbers<[1], [0], [0], [1], [0, 0, 1, 1], [], []>} : vector<16x32xbf16>, vector<32x32xbf16>, vector<16x32xf32> -> vector<16x32xf32>
    %c11 = arith.constant 11 : index
    %c0_56 = arith.constant 0 : index
    %198 = vector.load %arg3[%c11, %c0_56] : memref<19x128xf32, #tpu.memory_space<vmem>>, vector<1x32xf32>
    %199 = vector.broadcast %198 : vector<1x32xf32> to vector<16x32xf32>
    %200 = arith.addf %197, %199 : vector<16x32xf32>
    %201 = arith.addf %147, %200 : vector<16x32xf32>
    %c12 = arith.constant 12 : index
    %c0_57 = arith.constant 0 : index
    %202 = vector.load %arg3[%c12, %c0_57] : memref<19x128xf32, #tpu.memory_space<vmem>>, vector<1x32xf32>
    %c13 = arith.constant 13 : index
    %c0_58 = arith.constant 0 : index
    %203 = vector.load %arg3[%c13, %c0_58] : memref<19x128xf32, #tpu.memory_space<vmem>>, vector<1x32xf32>
    %cst_59 = arith.constant dense<0.000000e+00> : vector<16xf32>
    %204 = vector.multi_reduction <add>, %201, %cst_59 [1] : vector<16x32xf32> to vector<16xf32>
    %205 = vector.shape_cast %204 : vector<16xf32> to vector<16x1xf32>
    %cst_60 = arith.constant 3.200000e+01 : f32
    %206 = vector.broadcast %cst_60 : f32 to vector<16x1xf32>
    %207 = arith.divf %205, %206 : vector<16x1xf32>
    %208 = vector.broadcast %207 : vector<16x1xf32> to vector<16x32xf32>
    %209 = arith.subf %201, %208 : vector<16x32xf32>
    %210 = arith.mulf %209, %209 : vector<16x32xf32>
    %cst_61 = arith.constant dense<0.000000e+00> : vector<16xf32>
    %211 = vector.multi_reduction <add>, %210, %cst_61 [1] : vector<16x32xf32> to vector<16xf32>
    %212 = vector.shape_cast %211 : vector<16xf32> to vector<16x1xf32>
    %cst_62 = arith.constant 3.200000e+01 : f32
    %213 = vector.broadcast %cst_62 : f32 to vector<16x1xf32>
    %214 = arith.divf %212, %213 : vector<16x1xf32>
    %cst_63 = arith.constant 9.99999996E-13 : f32
    %215 = vector.broadcast %cst_63 : f32 to vector<16x1xf32>
    %216 = arith.addf %214, %215 : vector<16x1xf32>
    %217 = math.rsqrt %216 : vector<16x1xf32>
    %218 = vector.broadcast %217 : vector<16x1xf32> to vector<16x32xf32>
    %219 = arith.mulf %209, %218 : vector<16x32xf32>
    %220 = vector.broadcast %202 : vector<1x32xf32> to vector<16x32xf32>
    %221 = arith.mulf %219, %220 : vector<16x32xf32>
    %222 = vector.broadcast %203 : vector<1x32xf32> to vector<16x32xf32>
    %223 = arith.addf %221, %222 : vector<16x32xf32>
    %224 = arith.truncf %223 : vector<16x32xf32> to vector<16x32xbf16>
    %c288 = arith.constant 288 : index
    %c0_64 = arith.constant 0 : index
    %225 = vector.load %arg2[%c288, %c0_64] : memref<512x128xbf16, #tpu.memory_space<vmem>>, vector<32x128xbf16>
    %cst_65 = arith.constant dense<0.000000e+00> : vector<16x128xf32>
    %226 = tpu.matmul %224, %225, %cst_65 {dimension_numbers = #tpu.dot_dimension_numbers<[1], [0], [0], [1], [0, 0, 1, 1], [], []>} : vector<16x32xbf16>, vector<32x128xbf16>, vector<16x128xf32> -> vector<16x128xf32>
    %c14 = arith.constant 14 : index
    %c0_66 = arith.constant 0 : index
    %227 = vector.load %arg3[%c14, %c0_66] : memref<19x128xf32, #tpu.memory_space<vmem>>, vector<1x128xf32>
    %228 = vector.broadcast %227 : vector<1x128xf32> to vector<16x128xf32>
    %229 = arith.addf %226, %228 : vector<16x128xf32>
    %cst_67 = arith.constant 5.000000e-01 : f32
    %230 = vector.broadcast %cst_67 : f32 to vector<16x128xf32>
    %231 = arith.mulf %230, %229 : vector<16x128xf32>
    %cst_68 = arith.constant 4.471500e-02 : f32
    %232 = vector.broadcast %cst_68 : f32 to vector<16x128xf32>
    %233 = arith.mulf %232, %229 : vector<16x128xf32>
    %234 = arith.mulf %233, %229 : vector<16x128xf32>
    %235 = arith.mulf %234, %229 : vector<16x128xf32>
    %236 = arith.addf %229, %235 : vector<16x128xf32>
    %cst_69 = arith.constant 0.797884583 : f32
    %237 = vector.broadcast %cst_69 : f32 to vector<16x128xf32>
    %238 = arith.mulf %237, %236 : vector<16x128xf32>
    %239 = math.tanh %238 : vector<16x128xf32>
    %cst_70 = arith.constant 1.000000e+00 : f32
    %240 = vector.broadcast %cst_70 : f32 to vector<16x128xf32>
    %241 = arith.addf %240, %239 : vector<16x128xf32>
    %242 = arith.mulf %231, %241 : vector<16x128xf32>
    %243 = arith.truncf %242 : vector<16x128xf32> to vector<16x128xbf16>
    %c320 = arith.constant 320 : index
    %c0_71 = arith.constant 0 : index
    %244 = vector.load %arg2[%c320, %c0_71] : memref<512x128xbf16, #tpu.memory_space<vmem>>, vector<128x32xbf16>
    %cst_72 = arith.constant dense<0.000000e+00> : vector<16x32xf32>
    %245 = tpu.matmul %243, %244, %cst_72 {dimension_numbers = #tpu.dot_dimension_numbers<[1], [0], [0], [1], [0, 0, 1, 1], [], []>} : vector<16x128xbf16>, vector<128x32xbf16>, vector<16x32xf32> -> vector<16x32xf32>
    %c15 = arith.constant 15 : index
    %c0_73 = arith.constant 0 : index
    %246 = vector.load %arg3[%c15, %c0_73] : memref<19x128xf32, #tpu.memory_space<vmem>>, vector<1x32xf32>
    %247 = vector.broadcast %246 : vector<1x32xf32> to vector<16x32xf32>
    %248 = arith.addf %245, %247 : vector<16x32xf32>
    %249 = arith.addf %223, %248 : vector<16x32xf32>
    %c16 = arith.constant 16 : index
    %c0_74 = arith.constant 0 : index
    %250 = vector.load %arg3[%c16, %c0_74] : memref<19x128xf32, #tpu.memory_space<vmem>>, vector<1x32xf32>
    %c17 = arith.constant 17 : index
    %c0_75 = arith.constant 0 : index
    %251 = vector.load %arg3[%c17, %c0_75] : memref<19x128xf32, #tpu.memory_space<vmem>>, vector<1x32xf32>
    %cst_76 = arith.constant dense<0.000000e+00> : vector<16xf32>
    %252 = vector.multi_reduction <add>, %249, %cst_76 [1] : vector<16x32xf32> to vector<16xf32>
    %253 = vector.shape_cast %252 : vector<16xf32> to vector<16x1xf32>
    %cst_77 = arith.constant 3.200000e+01 : f32
    %254 = vector.broadcast %cst_77 : f32 to vector<16x1xf32>
    %255 = arith.divf %253, %254 : vector<16x1xf32>
    %256 = vector.broadcast %255 : vector<16x1xf32> to vector<16x32xf32>
    %257 = arith.subf %249, %256 : vector<16x32xf32>
    %258 = arith.mulf %257, %257 : vector<16x32xf32>
    %cst_78 = arith.constant dense<0.000000e+00> : vector<16xf32>
    %259 = vector.multi_reduction <add>, %258, %cst_78 [1] : vector<16x32xf32> to vector<16xf32>
    %260 = vector.shape_cast %259 : vector<16xf32> to vector<16x1xf32>
    %cst_79 = arith.constant 3.200000e+01 : f32
    %261 = vector.broadcast %cst_79 : f32 to vector<16x1xf32>
    %262 = arith.divf %260, %261 : vector<16x1xf32>
    %cst_80 = arith.constant 9.99999996E-13 : f32
    %263 = vector.broadcast %cst_80 : f32 to vector<16x1xf32>
    %264 = arith.addf %262, %263 : vector<16x1xf32>
    %265 = math.rsqrt %264 : vector<16x1xf32>
    %266 = vector.broadcast %265 : vector<16x1xf32> to vector<16x32xf32>
    %267 = arith.mulf %257, %266 : vector<16x32xf32>
    %268 = vector.broadcast %250 : vector<1x32xf32> to vector<16x32xf32>
    %269 = arith.mulf %267, %268 : vector<16x32xf32>
    %270 = vector.broadcast %251 : vector<1x32xf32> to vector<16x32xf32>
    %271 = arith.addf %269, %270 : vector<16x32xf32>
    %c448 = arith.constant 448 : index
    %c0_81 = arith.constant 0 : index
    %272 = vector.load %arg2[%c448, %c0_81] : memref<512x128xbf16, #tpu.memory_space<vmem>>, vector<32x128xbf16>
    %c480 = arith.constant 480 : index
    %c0_82 = arith.constant 0 : index
    %273 = vector.load %arg2[%c480, %c0_82] : memref<512x128xbf16, #tpu.memory_space<vmem>>, vector<32x128xbf16>
    %c18 = arith.constant 18 : index
    %c0_83 = arith.constant 0 : index
    %274 = vector.load %arg3[%c18, %c0_83] : memref<19x128xf32, #tpu.memory_space<vmem>>, vector<1x128xf32>
    %275 = arith.truncf %271 : vector<16x32xf32> to vector<16x32xbf16>
    %cst_84 = arith.constant dense<0.000000e+00> : vector<16x128xf32>
    %276 = tpu.matmul %275, %272, %cst_84 {dimension_numbers = #tpu.dot_dimension_numbers<[1], [0], [0], [1], [0, 0, 1, 1], [], []>} : vector<16x32xbf16>, vector<32x128xbf16>, vector<16x128xf32> -> vector<16x128xf32>
    %277 = vector.broadcast %274 : vector<1x128xf32> to vector<16x128xf32>
    %278 = arith.addf %276, %277 : vector<16x128xf32>
    %279 = vector.extract_strided_slice %278 {offsets = [0, 0], sizes = [1, 128], strides = [1, 1]} : vector<16x128xf32> to vector<1x128xf32>
    %280 = vector.extract_strided_slice %278 {offsets = [8, 0], sizes = [1, 128], strides = [1, 1]} : vector<16x128xf32> to vector<1x128xf32>
    %281 = tpu.concatenate %279, %280 in 0 : vector<1x128xf32>, vector<1x128xf32> -> vector<2x128xf32>
    %282 = vector.extract_strided_slice %278 {offsets = [1, 0], sizes = [1, 128], strides = [1, 1]} : vector<16x128xf32> to vector<1x128xf32>
    %283 = vector.extract_strided_slice %278 {offsets = [9, 0], sizes = [1, 128], strides = [1, 1]} : vector<16x128xf32> to vector<1x128xf32>
    %284 = tpu.concatenate %282, %283 in 0 : vector<1x128xf32>, vector<1x128xf32> -> vector<2x128xf32>
    %285 = vector.extract_strided_slice %278 {offsets = [2, 0], sizes = [1, 128], strides = [1, 1]} : vector<16x128xf32> to vector<1x128xf32>
    %286 = vector.extract_strided_slice %278 {offsets = [10, 0], sizes = [1, 128], strides = [1, 1]} : vector<16x128xf32> to vector<1x128xf32>
    %287 = tpu.concatenate %285, %286 in 0 : vector<1x128xf32>, vector<1x128xf32> -> vector<2x128xf32>
    %288 = vector.extract_strided_slice %278 {offsets = [3, 0], sizes = [1, 128], strides = [1, 1]} : vector<16x128xf32> to vector<1x128xf32>
    %289 = vector.extract_strided_slice %278 {offsets = [11, 0], sizes = [1, 128], strides = [1, 1]} : vector<16x128xf32> to vector<1x128xf32>
    %290 = tpu.concatenate %288, %289 in 0 : vector<1x128xf32>, vector<1x128xf32> -> vector<2x128xf32>
    %291 = vector.extract_strided_slice %278 {offsets = [4, 0], sizes = [1, 128], strides = [1, 1]} : vector<16x128xf32> to vector<1x128xf32>
    %292 = vector.extract_strided_slice %278 {offsets = [12, 0], sizes = [1, 128], strides = [1, 1]} : vector<16x128xf32> to vector<1x128xf32>
    %293 = tpu.concatenate %291, %292 in 0 : vector<1x128xf32>, vector<1x128xf32> -> vector<2x128xf32>
    %294 = vector.extract_strided_slice %278 {offsets = [5, 0], sizes = [1, 128], strides = [1, 1]} : vector<16x128xf32> to vector<1x128xf32>
    %295 = vector.extract_strided_slice %278 {offsets = [13, 0], sizes = [1, 128], strides = [1, 1]} : vector<16x128xf32> to vector<1x128xf32>
    %296 = tpu.concatenate %294, %295 in 0 : vector<1x128xf32>, vector<1x128xf32> -> vector<2x128xf32>
    %297 = vector.extract_strided_slice %278 {offsets = [6, 0], sizes = [1, 128], strides = [1, 1]} : vector<16x128xf32> to vector<1x128xf32>
    %298 = vector.extract_strided_slice %278 {offsets = [14, 0], sizes = [1, 128], strides = [1, 1]} : vector<16x128xf32> to vector<1x128xf32>
    %299 = tpu.concatenate %297, %298 in 0 : vector<1x128xf32>, vector<1x128xf32> -> vector<2x128xf32>
    %300 = vector.extract_strided_slice %278 {offsets = [7, 0], sizes = [1, 128], strides = [1, 1]} : vector<16x128xf32> to vector<1x128xf32>
    %301 = vector.extract_strided_slice %278 {offsets = [15, 0], sizes = [1, 128], strides = [1, 1]} : vector<16x128xf32> to vector<1x128xf32>
    %302 = tpu.concatenate %300, %301 in 0 : vector<1x128xf32>, vector<1x128xf32> -> vector<2x128xf32>
    %cst_85 = arith.constant 0.000000e+00 : f32
    %303 = vector.broadcast %cst_85 : f32 to vector<2x32xf32>
    %cst_86 = arith.constant 0.000000e+00 : f32
    %304 = vector.broadcast %cst_86 : f32 to vector<2x32xf32>
    %305 = arith.truncf %303 : vector<2x32xf32> to vector<2x32xbf16>
    %cst_87 = arith.constant dense<0.000000e+00> : vector<2x128xf32>
    %306 = tpu.matmul %305, %273, %cst_87 {dimension_numbers = #tpu.dot_dimension_numbers<[1], [0], [0], [1], [0, 0, 1, 1], [], []>} : vector<2x32xbf16>, vector<32x128xbf16>, vector<2x128xf32> -> vector<2x128xf32>
    %307 = arith.addf %281, %306 : vector<2x128xf32>
    %308 = arith.negf %307 : vector<2x128xf32>
    %309 = math.exp %308 : vector<2x128xf32>
    %cst_88 = arith.constant 1.000000e+00 : f32
    %310 = vector.broadcast %cst_88 : f32 to vector<2x128xf32>
    %311 = arith.addf %310, %309 : vector<2x128xf32>
    %312 = arith.divf %310, %311 : vector<2x128xf32>
    %313 = vector.extract_strided_slice %312 {offsets = [0, 0], sizes = [2, 32], strides = [1, 1]} : vector<2x128xf32> to vector<2x32xf32>
    %314 = vector.extract_strided_slice %312 {offsets = [0, 32], sizes = [2, 32], strides = [1, 1]} : vector<2x128xf32> to vector<2x32xf32>
    %315 = vector.extract_strided_slice %312 {offsets = [0, 96], sizes = [2, 32], strides = [1, 1]} : vector<2x128xf32> to vector<2x32xf32>
    %316 = vector.extract_strided_slice %307 {offsets = [0, 64], sizes = [2, 32], strides = [1, 1]} : vector<2x128xf32> to vector<2x32xf32>
    %317 = math.tanh %316 : vector<2x32xf32>
    %318 = arith.mulf %314, %304 : vector<2x32xf32>
    %319 = arith.mulf %313, %317 : vector<2x32xf32>
    %320 = arith.addf %318, %319 : vector<2x32xf32>
    %321 = math.tanh %320 : vector<2x32xf32>
    %322 = arith.mulf %315, %321 : vector<2x32xf32>
    %323 = arith.truncf %322 : vector<2x32xf32> to vector<2x32xbf16>
    %cst_89 = arith.constant dense<0.000000e+00> : vector<2x128xf32>
    %324 = tpu.matmul %323, %273, %cst_89 {dimension_numbers = #tpu.dot_dimension_numbers<[1], [0], [0], [1], [0, 0, 1, 1], [], []>} : vector<2x32xbf16>, vector<32x128xbf16>, vector<2x128xf32> -> vector<2x128xf32>
    %325 = arith.addf %284, %324 : vector<2x128xf32>
    %326 = arith.negf %325 : vector<2x128xf32>
    %327 = math.exp %326 : vector<2x128xf32>
    %cst_90 = arith.constant 1.000000e+00 : f32
    %328 = vector.broadcast %cst_90 : f32 to vector<2x128xf32>
    %329 = arith.addf %328, %327 : vector<2x128xf32>
    %330 = arith.divf %328, %329 : vector<2x128xf32>
    %331 = vector.extract_strided_slice %330 {offsets = [0, 0], sizes = [2, 32], strides = [1, 1]} : vector<2x128xf32> to vector<2x32xf32>
    %332 = vector.extract_strided_slice %330 {offsets = [0, 32], sizes = [2, 32], strides = [1, 1]} : vector<2x128xf32> to vector<2x32xf32>
    %333 = vector.extract_strided_slice %330 {offsets = [0, 96], sizes = [2, 32], strides = [1, 1]} : vector<2x128xf32> to vector<2x32xf32>
    %334 = vector.extract_strided_slice %325 {offsets = [0, 64], sizes = [2, 32], strides = [1, 1]} : vector<2x128xf32> to vector<2x32xf32>
    %335 = math.tanh %334 : vector<2x32xf32>
    %336 = arith.mulf %332, %320 : vector<2x32xf32>
    %337 = arith.mulf %331, %335 : vector<2x32xf32>
    %338 = arith.addf %336, %337 : vector<2x32xf32>
    %339 = math.tanh %338 : vector<2x32xf32>
    %340 = arith.mulf %333, %339 : vector<2x32xf32>
    %341 = arith.truncf %340 : vector<2x32xf32> to vector<2x32xbf16>
    %cst_91 = arith.constant dense<0.000000e+00> : vector<2x128xf32>
    %342 = tpu.matmul %341, %273, %cst_91 {dimension_numbers = #tpu.dot_dimension_numbers<[1], [0], [0], [1], [0, 0, 1, 1], [], []>} : vector<2x32xbf16>, vector<32x128xbf16>, vector<2x128xf32> -> vector<2x128xf32>
    %343 = arith.addf %287, %342 : vector<2x128xf32>
    %344 = arith.negf %343 : vector<2x128xf32>
    %345 = math.exp %344 : vector<2x128xf32>
    %cst_92 = arith.constant 1.000000e+00 : f32
    %346 = vector.broadcast %cst_92 : f32 to vector<2x128xf32>
    %347 = arith.addf %346, %345 : vector<2x128xf32>
    %348 = arith.divf %346, %347 : vector<2x128xf32>
    %349 = vector.extract_strided_slice %348 {offsets = [0, 0], sizes = [2, 32], strides = [1, 1]} : vector<2x128xf32> to vector<2x32xf32>
    %350 = vector.extract_strided_slice %348 {offsets = [0, 32], sizes = [2, 32], strides = [1, 1]} : vector<2x128xf32> to vector<2x32xf32>
    %351 = vector.extract_strided_slice %348 {offsets = [0, 96], sizes = [2, 32], strides = [1, 1]} : vector<2x128xf32> to vector<2x32xf32>
    %352 = vector.extract_strided_slice %343 {offsets = [0, 64], sizes = [2, 32], strides = [1, 1]} : vector<2x128xf32> to vector<2x32xf32>
    %353 = math.tanh %352 : vector<2x32xf32>
    %354 = arith.mulf %350, %338 : vector<2x32xf32>
    %355 = arith.mulf %349, %353 : vector<2x32xf32>
    %356 = arith.addf %354, %355 : vector<2x32xf32>
    %357 = math.tanh %356 : vector<2x32xf32>
    %358 = arith.mulf %351, %357 : vector<2x32xf32>
    %359 = arith.truncf %358 : vector<2x32xf32> to vector<2x32xbf16>
    %cst_93 = arith.constant dense<0.000000e+00> : vector<2x128xf32>
    %360 = tpu.matmul %359, %273, %cst_93 {dimension_numbers = #tpu.dot_dimension_numbers<[1], [0], [0], [1], [0, 0, 1, 1], [], []>} : vector<2x32xbf16>, vector<32x128xbf16>, vector<2x128xf32> -> vector<2x128xf32>
    %361 = arith.addf %290, %360 : vector<2x128xf32>
    %362 = arith.negf %361 : vector<2x128xf32>
    %363 = math.exp %362 : vector<2x128xf32>
    %cst_94 = arith.constant 1.000000e+00 : f32
    %364 = vector.broadcast %cst_94 : f32 to vector<2x128xf32>
    %365 = arith.addf %364, %363 : vector<2x128xf32>
    %366 = arith.divf %364, %365 : vector<2x128xf32>
    %367 = vector.extract_strided_slice %366 {offsets = [0, 0], sizes = [2, 32], strides = [1, 1]} : vector<2x128xf32> to vector<2x32xf32>
    %368 = vector.extract_strided_slice %366 {offsets = [0, 32], sizes = [2, 32], strides = [1, 1]} : vector<2x128xf32> to vector<2x32xf32>
    %369 = vector.extract_strided_slice %366 {offsets = [0, 96], sizes = [2, 32], strides = [1, 1]} : vector<2x128xf32> to vector<2x32xf32>
    %370 = vector.extract_strided_slice %361 {offsets = [0, 64], sizes = [2, 32], strides = [1, 1]} : vector<2x128xf32> to vector<2x32xf32>
    %371 = math.tanh %370 : vector<2x32xf32>
    %372 = arith.mulf %368, %356 : vector<2x32xf32>
    %373 = arith.mulf %367, %371 : vector<2x32xf32>
    %374 = arith.addf %372, %373 : vector<2x32xf32>
    %375 = math.tanh %374 : vector<2x32xf32>
    %376 = arith.mulf %369, %375 : vector<2x32xf32>
    %377 = arith.truncf %376 : vector<2x32xf32> to vector<2x32xbf16>
    %cst_95 = arith.constant dense<0.000000e+00> : vector<2x128xf32>
    %378 = tpu.matmul %377, %273, %cst_95 {dimension_numbers = #tpu.dot_dimension_numbers<[1], [0], [0], [1], [0, 0, 1, 1], [], []>} : vector<2x32xbf16>, vector<32x128xbf16>, vector<2x128xf32> -> vector<2x128xf32>
    %379 = arith.addf %293, %378 : vector<2x128xf32>
    %380 = arith.negf %379 : vector<2x128xf32>
    %381 = math.exp %380 : vector<2x128xf32>
    %cst_96 = arith.constant 1.000000e+00 : f32
    %382 = vector.broadcast %cst_96 : f32 to vector<2x128xf32>
    %383 = arith.addf %382, %381 : vector<2x128xf32>
    %384 = arith.divf %382, %383 : vector<2x128xf32>
    %385 = vector.extract_strided_slice %384 {offsets = [0, 0], sizes = [2, 32], strides = [1, 1]} : vector<2x128xf32> to vector<2x32xf32>
    %386 = vector.extract_strided_slice %384 {offsets = [0, 32], sizes = [2, 32], strides = [1, 1]} : vector<2x128xf32> to vector<2x32xf32>
    %387 = vector.extract_strided_slice %384 {offsets = [0, 96], sizes = [2, 32], strides = [1, 1]} : vector<2x128xf32> to vector<2x32xf32>
    %388 = vector.extract_strided_slice %379 {offsets = [0, 64], sizes = [2, 32], strides = [1, 1]} : vector<2x128xf32> to vector<2x32xf32>
    %389 = math.tanh %388 : vector<2x32xf32>
    %390 = arith.mulf %386, %374 : vector<2x32xf32>
    %391 = arith.mulf %385, %389 : vector<2x32xf32>
    %392 = arith.addf %390, %391 : vector<2x32xf32>
    %393 = math.tanh %392 : vector<2x32xf32>
    %394 = arith.mulf %387, %393 : vector<2x32xf32>
    %395 = arith.truncf %394 : vector<2x32xf32> to vector<2x32xbf16>
    %cst_97 = arith.constant dense<0.000000e+00> : vector<2x128xf32>
    %396 = tpu.matmul %395, %273, %cst_97 {dimension_numbers = #tpu.dot_dimension_numbers<[1], [0], [0], [1], [0, 0, 1, 1], [], []>} : vector<2x32xbf16>, vector<32x128xbf16>, vector<2x128xf32> -> vector<2x128xf32>
    %397 = arith.addf %296, %396 : vector<2x128xf32>
    %398 = arith.negf %397 : vector<2x128xf32>
    %399 = math.exp %398 : vector<2x128xf32>
    %cst_98 = arith.constant 1.000000e+00 : f32
    %400 = vector.broadcast %cst_98 : f32 to vector<2x128xf32>
    %401 = arith.addf %400, %399 : vector<2x128xf32>
    %402 = arith.divf %400, %401 : vector<2x128xf32>
    %403 = vector.extract_strided_slice %402 {offsets = [0, 0], sizes = [2, 32], strides = [1, 1]} : vector<2x128xf32> to vector<2x32xf32>
    %404 = vector.extract_strided_slice %402 {offsets = [0, 32], sizes = [2, 32], strides = [1, 1]} : vector<2x128xf32> to vector<2x32xf32>
    %405 = vector.extract_strided_slice %402 {offsets = [0, 96], sizes = [2, 32], strides = [1, 1]} : vector<2x128xf32> to vector<2x32xf32>
    %406 = vector.extract_strided_slice %397 {offsets = [0, 64], sizes = [2, 32], strides = [1, 1]} : vector<2x128xf32> to vector<2x32xf32>
    %407 = math.tanh %406 : vector<2x32xf32>
    %408 = arith.mulf %404, %392 : vector<2x32xf32>
    %409 = arith.mulf %403, %407 : vector<2x32xf32>
    %410 = arith.addf %408, %409 : vector<2x32xf32>
    %411 = math.tanh %410 : vector<2x32xf32>
    %412 = arith.mulf %405, %411 : vector<2x32xf32>
    %413 = arith.truncf %412 : vector<2x32xf32> to vector<2x32xbf16>
    %cst_99 = arith.constant dense<0.000000e+00> : vector<2x128xf32>
    %414 = tpu.matmul %413, %273, %cst_99 {dimension_numbers = #tpu.dot_dimension_numbers<[1], [0], [0], [1], [0, 0, 1, 1], [], []>} : vector<2x32xbf16>, vector<32x128xbf16>, vector<2x128xf32> -> vector<2x128xf32>
    %415 = arith.addf %299, %414 : vector<2x128xf32>
    %416 = arith.negf %415 : vector<2x128xf32>
    %417 = math.exp %416 : vector<2x128xf32>
    %cst_100 = arith.constant 1.000000e+00 : f32
    %418 = vector.broadcast %cst_100 : f32 to vector<2x128xf32>
    %419 = arith.addf %418, %417 : vector<2x128xf32>
    %420 = arith.divf %418, %419 : vector<2x128xf32>
    %421 = vector.extract_strided_slice %420 {offsets = [0, 0], sizes = [2, 32], strides = [1, 1]} : vector<2x128xf32> to vector<2x32xf32>
    %422 = vector.extract_strided_slice %420 {offsets = [0, 32], sizes = [2, 32], strides = [1, 1]} : vector<2x128xf32> to vector<2x32xf32>
    %423 = vector.extract_strided_slice %420 {offsets = [0, 96], sizes = [2, 32], strides = [1, 1]} : vector<2x128xf32> to vector<2x32xf32>
    %424 = vector.extract_strided_slice %415 {offsets = [0, 64], sizes = [2, 32], strides = [1, 1]} : vector<2x128xf32> to vector<2x32xf32>
    %425 = math.tanh %424 : vector<2x32xf32>
    %426 = arith.mulf %422, %410 : vector<2x32xf32>
    %427 = arith.mulf %421, %425 : vector<2x32xf32>
    %428 = arith.addf %426, %427 : vector<2x32xf32>
    %429 = math.tanh %428 : vector<2x32xf32>
    %430 = arith.mulf %423, %429 : vector<2x32xf32>
    %431 = arith.truncf %430 : vector<2x32xf32> to vector<2x32xbf16>
    %cst_101 = arith.constant dense<0.000000e+00> : vector<2x128xf32>
    %432 = tpu.matmul %431, %273, %cst_101 {dimension_numbers = #tpu.dot_dimension_numbers<[1], [0], [0], [1], [0, 0, 1, 1], [], []>} : vector<2x32xbf16>, vector<32x128xbf16>, vector<2x128xf32> -> vector<2x128xf32>
    %433 = arith.addf %302, %432 : vector<2x128xf32>
    %434 = arith.negf %433 : vector<2x128xf32>
    %435 = math.exp %434 : vector<2x128xf32>
    %cst_102 = arith.constant 1.000000e+00 : f32
    %436 = vector.broadcast %cst_102 : f32 to vector<2x128xf32>
    %437 = arith.addf %436, %435 : vector<2x128xf32>
    %438 = arith.divf %436, %437 : vector<2x128xf32>
    %439 = vector.extract_strided_slice %438 {offsets = [0, 0], sizes = [2, 32], strides = [1, 1]} : vector<2x128xf32> to vector<2x32xf32>
    %440 = vector.extract_strided_slice %438 {offsets = [0, 32], sizes = [2, 32], strides = [1, 1]} : vector<2x128xf32> to vector<2x32xf32>
    %441 = vector.extract_strided_slice %438 {offsets = [0, 96], sizes = [2, 32], strides = [1, 1]} : vector<2x128xf32> to vector<2x32xf32>
    %442 = vector.extract_strided_slice %433 {offsets = [0, 64], sizes = [2, 32], strides = [1, 1]} : vector<2x128xf32> to vector<2x32xf32>
    %443 = math.tanh %442 : vector<2x32xf32>
    %444 = arith.mulf %440, %428 : vector<2x32xf32>
    %445 = arith.mulf %439, %443 : vector<2x32xf32>
    %446 = arith.addf %444, %445 : vector<2x32xf32>
    %447 = math.tanh %446 : vector<2x32xf32>
    %448 = arith.mulf %441, %447 : vector<2x32xf32>
    %449 = tpu.concatenate %322, %340, %358, %376, %394, %412, %430, %448 in 1 : vector<2x32xf32>, vector<2x32xf32>, vector<2x32xf32>, vector<2x32xf32>, vector<2x32xf32>, vector<2x32xf32>, vector<2x32xf32>, vector<2x32xf32> -> vector<2x256xf32>
    %c0_103 = arith.constant 0 : index
    %c0_104 = arith.constant 0 : index
    %450 = vector.load %arg4[%c0_103, %c0_104] : memref<2x256xf32, #tpu.memory_space<vmem>>, vector<2x256xf32>
    tpu.vector_store %arg4[%c0_103, %c0_104], %449 {strides = array<i32>} : memref<2x256xf32, #tpu.memory_space<vmem>>, vector<2x256xf32>,
    return
  }
}

</mosaic_0001>

<bundles_post_ra>
// kernel: bert_qpp_forward.1
= control target key start
LH: loop header
LB: loop body
LE: loop exit
PB: predicated region body
PF: predicated region fallthrough
CT: control target
= control target key end

     0   :  { %vm22_vm0 = vcmask 261120   ;;  %v2565_v15 = vmov 0.0   ;;  %vm2566_vm1 = vmmov 0   ;;  %s2567_s28 = smov 112   ;;  %vm148_vm2 = vcmask 130048   ;;  %s2568_s29 = smov 96   ;;  %s3104_s0 = inlined_call_operand.vmem [shape: f32[16,32], index: 0, kind: input, shape index: {}]   ;;  %s3105_s2 = inlined_call_operand.vmem [shape: bf16[512,128], index: 2, kind: input, shape index: {}]   ;;  %s3106_s3 = inlined_call_operand.vmem [shape: f32[19,128], index: 3, kind: input, shape index: {}]   ;;  %s3107_s1 = inlined_call_operand.vmem [shape: f32[32,32], index: 1, kind: input, shape index: {}]   ;;  %s3108_s4 = inlined_call_operand.vmem [shape: f32[2,256], index: 4, kind: output, shape index: {}]  }
   0x1   :  { %v18_v0 = vld [vmem:[%s3104_s0] sm:$0xff]  ;;  %v19_v1 = vld [vmem:[%s3104_s0 + $0x8] sm:$0xff]  ;;  %2195 = vmatprep.subr.bf16.mxu0 %v2565_v15  ;;  %2199 = vmatprep.mubr.msk.bf16.mxu0 %vm2566_vm1, %v2565_v15  ;;  %v2668_v57 = vld [vmem:[%s3107_s1 + $0x10] sm:$0xff]  ;;  %s2570_s16 = smov 16   ;;  %vm1366_vm3 = vcmask 1040384   ;;  %vm2011_vm4 = vcmask 523264  }
   0x2   :  { %v23_v2 = vsel %vm22_vm0, %v18_v0, 0.0  ;;  %v26_v3 = vsel %vm22_vm0, %v19_v1, 0.0  ;;  %v2409_v14 = vld [vmem:[%s3105_s2] sm:$0xff]   ;;  %v2410_v16 = vld [vmem:[%s3105_s2 + $0x8] sm:$0xff]   ;;  %vm2013_vm5 = vcmask 785408  }
   0x3   :  { %24 = vadd.xlane.f32.xlu0 %v23_v2  ;;  %2196 = vmatpush3.bf16.msra.mxu0 %v2409_v14  ;;  %v2034_v25 = vld [vmem:[%s3106_s3] ss:$0 sm:$0xff]  ;;  %v2035_v29 = vld [vmem:[%s3106_s3 + $0x1] ss:$0 sm:$0xff]  ;;  %v2036_v34 = vld [vmem:[%s3106_s3 + $0x2] ss:$0 sm:$0xff] }
   0x4   :  { %2197 = vmatprep.subr.bf16.mxu0 %v2565_v15  ;;  %v2658_v51 = vld [vmem:[%s3107_s1] sm:$0xff]  ;;  %v2663_v56 = vld [vmem:[%s3107_s1 + $0x8] sm:$0xff] }
   0x7   :  { %27 = vadd.xlane.f32.xlu0 %v26_v3  ;;  %2198 = vmatpush3.bf16.msra.mxu0 %v2410_v16 }
  0x90   :  { %v25_v4 = vpop.xlane.xlu0 %24 }
  0x91   :  { %v30_v5 = vmul.f32 0.03125, %v25_v4 }
  0x93   :  { %v32_v6 = vsub.f32 %v18_v0, %v30_v5  ;;  %v2677_v0 = vld [vmem:[%s3107_s1 + $0x18] sm:$0xff]  ;;  %s2569_s1 = smov 64  }
  0x94   :  { %v28_v7 = vpop.xlane.xlu0 %27 }
  0x95   :  { %v31_v8 = vmul.f32 0.03125, %v28_v7  ;;  %v34_v9 = vmul.f32 %v32_v6, %v32_v6 }
  0x97   :  { %v33_v10 = vsub.f32 %v19_v1, %v31_v8  ;;  %v36_v11 = vsel %vm22_vm0, %v34_v9, 0.0 }
  0x98   :  { %37 = vadd.xlane.f32.xlu1 %v36_v11 }
  0x99   :  { %v35_v12 = vmul.f32 %v33_v10, %v33_v10 }
  0x9b   :  { %v39_v13 = vsel %vm22_vm0, %v35_v12, 0.0 }
  0x9c   :  { %40 = vadd.xlane.f32.xlu1 %v39_v13 }
 0x125   :  { %v38_v17 = vpop.xlane.xlu1 %37 }
 0x126   :  { %v42_v18 = vmul.f32 0.03125, %v38_v17 }
 0x128   :  { %v44_v19 = vadd.f32 1e-12, %v42_v18 }
 0x129   :  { %v41_v20 = vpop.xlane.xlu1 %40 }
 0x12a   :  { %2441 = vrsqrt.f32 %v44_v19  ;;  %v43_v21 = vmul.f32 0.03125, %v41_v20 }
 0x12c   :  { %v45_v22 = vadd.f32 1e-12, %v43_v21 }
 0x12e   :  { %2443 = vrsqrt.f32 %v45_v22 }
 0x134   :  { %v2442_v23 = vpop.eup %2441 }
 0x135   :  { %v48_v24 = vmul.f32 %v2442_v23, %v32_v6 }
 0x137   :  { %v54_v28 = vmul.f32 %v2034_v25, %v48_v24 }
 0x138   :  { %v2444_v26 = vpop.eup %2443 }
 0x139   :  { %v49_v27 = vmul.f32 %v2444_v26, %v33_v10  ;;  %v2624_v31 = vadd.f32 %v2035_v29, %v54_v28 }
 0x13b   :  { %v55_v30 = vmul.f32 %v2034_v25, %v49_v27 }
 0x13d   :  { %v2626_v32 = vadd.f32 %v2035_v29, %v55_v30 }
 0x13f   :  { %v66_v33 = vpack.c.bf16 %v2626_v32, %v2624_v31 }
 0x141   :  { %2200 = vmatmul.mubr.msk.bf16.vlgmr.msra.gmra.mrb[0].mxu0 %vm22_vm0, %v66_v33 }
 0x214   :  { %v125_v35 = vpop.f32.mrb[0].mxu0 }
 0x215   :  { %v126_v36 = vadd.f32 %v2036_v34, %v125_v35  ;;  %v2201_v37 = vpop.f32.mrb[1].mxu0 }
 0x216   :  { %v128_v38 = vpop.f32.mrb[2].mxu0 }
 0x217   :  { %v129_v39 = vadd.f32 %v2036_v34, %v128_v38  ;;  %133 = vrot.lane.b32.xlu0 %v126_v36, %s2567_s28  ;;  %v2202_v40 = vpop.f32.mrb[3].mxu0 }
 0x219   :  { %137 = vrot.lane.b32.xlu1 %v129_v39, %s2567_s28 }
 0x289   :  { %v134_v41 = vpop.permute.xlu0 %133 }
 0x28a   :  { %v2636_v42 = vpack.c.bf16 %v134_v41, %v126_v36 }
 0x28b   :  { %v138_v43 = vpop.permute.xlu1 %137 }
 0x28c   :  { %2207 = vmatprep.mubr.msk.bf16.mxu1 %vm148_vm2, %v2636_v42  ;;  %144 = vrot.lane.b32.xlu1 %v2636_v42, %s2568_s29  ;;  %v2642_v44 = vpack.c.bf16 %v138_v43, %v129_v39 }
 0x290   :  { %146 = vrot.lane.b32.xlu1 %v2642_v44, %s2568_s29 }
 0x2fe   :  { %v145_v45 = vpop.permute.xlu1 %144 }
 0x2ff   :  { %2387 = vmatprep.subr.msk.bf16.mxu1 %vm148_vm2, %v145_v45  ;;  %v156_v46 = vsel %vm148_vm2, %v145_v45, 0  ;;  %v2412_v45 = vld [vmem:[%s3105_s2 + $0x18] sm:$0xff]  }
 0x300   :  { %2204 = vmatpush3.bf16.xpose.msra.mxu1 %v156_v46 }
 0x302   :  { %v147_v47 = vpop.permute.xlu1 %146 }
 0x303   :  { %2388 = vmatprep.subr.msk.bf16.mxu1 %vm148_vm2, %v147_v47  ;;  %v159_v48 = vsel %vm148_vm2, %v147_v47, 0 }
 0x308   :  { %2206 = vmatpush3.bf16.xpose.msra.mxu1 %v159_v48 }
 0x309   :  { %2227 = vmatprep.subr.bf16.mxu1 %v2565_v15 }
 0x30f   :  { %2208 = vmatmul.mubr.msk.bf16.vlgmr.msra.gmra.mrb[0].mxu1 %vm148_vm2, %v2642_v44 }
 0x310   :  { %2231 = vmatprep.mubr.msk.bf16.mxu1 %vm2566_vm1, %v2565_v15 }
 0x3e2   :  { %v2209_v49 = vpop.f32.mrb[0].mxu1 }
 0x3e3   :  { %v195_v50 = vpop.f32.mrb[1].mxu1  ;;  %v212_v52 = vmul.f32 0.25, %v2209_v49 }
 0x3e4   :  { %v210_v53 = vmul.f32 0.25, %v195_v50  ;;  %v2210_v54 = vpop.f32.mrb[2].mxu1 }
 0x3e5   :  { %v198_v55 = vpop.f32.mrb[3].mxu1  ;;  %v213_v60 = vmul.f32 0.25, %v2210_v54  ;;  %v216_v63 = vadd.f32 %v212_v52, %v2668_v57 }
 0x3e6   :  { %v211_v58 = vmul.f32 0.25, %v198_v55  ;;  %v214_v59 = vadd.f32 %v210_v53, %v2658_v51 }
 0x3e7   :  { %v224_v2 = vsel %vm22_vm0, %v216_v63, -inf  ;;  %v217_v3 = vadd.f32 %v213_v60, %v2677_v0  ;;  %v2044_v60 = vld [vmem:[%s3106_s3 + $0x3] ss:$0 sm:$0xff] }
 0x3e8   :  { %v218_v61 = vsel %vm22_vm0, %v214_v59, -inf  ;;  %v215_v62 = vadd.f32 %v211_v58, %v2663_v56 }
 0x3e9   :  { %219 = vmax.xlane.f32.xlu0 %v218_v61  ;;  %v227_v4 = vsel %vm22_vm0, %v217_v3, -inf }
 0x3ea   :  { %v221_v1 = vsel %vm22_vm0, %v215_v62, -inf }
 0x3eb   :  { %222 = vmax.xlane.f32.xlu1 %v221_v1 }
 0x3ed   :  { %225 = vmax.xlane.f32.xlu0 %v224_v2 }
 0x3f1   :  { %228 = vmax.xlane.f32.xlu0 %v227_v4 }
 0x476   :  { %v220_v5 = vpop.xlane.xlu0 %219 }
 0x477   :  { %v230_v6 = vsub.f32 %v214_v59, %v220_v5 }
 0x478   :  { %v223_v7 = vpop.xlane.xlu1 %222 }
 0x479   :  { %v234_v10 = vmul.f32 1.442695, %v230_v6  ;;  %v231_v11 = vsub.f32 %v215_v62, %v223_v7 }
 0x47a   :  { %v226_v8 = vpop.xlane.xlu0 %225 }
 0x47b   :  { %v232_v9 = vsub.f32 %v216_v63, %v226_v8  ;;  %v236_v16 = vmul.f32 1.442695, %v231_v11 }
 0x47d   :  { %v238_v12 = vmul.f32 1.442695, %v232_v9 }
 0x47e   :  { %v229_v13 = vpop.xlane.xlu0 %228 }
 0x47f   :  { %2445 = vpow2.f32 %v238_v12  ;;  %v233_v14 = vsub.f32 %v217_v3, %v229_v13 }
 0x480   :  { %2447 = vpow2.f32 %v234_v10 }
 0x481   :  { %v240_v17 = vmul.f32 1.442695, %v233_v14 }
 0x483   :  { %2449 = vpow2.f32 %v240_v17 }
 0x484   :  { %2451 = vpow2.f32 %v236_v16 }
 0x489   :  { %v2446_v18 = vpop.eup %2445 }
 0x48a   :  { %v248_v19 = vsel %vm22_vm0, %v2446_v18, 0.0  ;;  %v2448_v20 = vpop.eup %2447 }
 0x48b   :  { %249 = vadd.xlane.f32.xlu0 %v248_v19  ;;  %v242_v22 = vsel %vm22_vm0, %v2448_v20, 0.0 }
 0x48d   :  { %v2450_v21 = vpop.eup %2449 }
 0x48e   :  { %v251_v23 = vsel %vm22_vm0, %v2450_v21, 0.0  ;;  %v2452_v24 = vpop.eup %2451 }
 0x48f   :  { %243 = vadd.xlane.f32.xlu0 %v242_v22  ;;  %252 = vadd.xlane.f32.xlu1 %v251_v23  ;;  %v245_v25 = vsel %vm22_vm0, %v2452_v24, 0.0 }
 0x493   :  { %246 = vadd.xlane.f32.xlu1 %v245_v25 }
 0x4a4   :  { %266 = vrot.lane.b32.xlu1 %v2642_v44, %s2569_s1  ;;  %v2411_v44 = vld [vmem:[%s3105_s2 + $0x10] sm:$0xff]  }
 0x4a5   :  { %264 = vrot.lane.b32.xlu0 %v2636_v42, %s2569_s1 }
 0x518   :  { %v250_v26 = vpop.xlane.xlu0 %249 }
 0x51c   :  { %v244_v27 = vpop.xlane.xlu0 %243  ;;  %v253_v28 = vpop.xlane.xlu1 %252 }
 0x51d   :  { %2453 = vrcp.f32 %v253_v28 }
 0x51e   :  { %2455 = vrcp.f32 %v244_v27  ;;  %v2048_v27 = vld [vmem:[%s3106_s3 + $0x4] ss:$0 sm:$0xff] }
 0x51f   :  { %2457 = vrcp.f32 %v250_v26 }
 0x520   :  { %v265_v29 = vpop.permute.xlu0 %264  ;;  %v247_v30 = vpop.xlane.xlu1 %246 }
 0x521   :  { %2459 = vrcp.f32 %v247_v30  ;;  %2211 = vmatprep.subr.bf16.mxu0 %v265_v29 }
 0x522   :  { %2212 = vmatpush3.bf16.msra.mxu0 %v265_v29 }
 0x524   :  { %v267_v33 = vpop.permute.xlu1 %266 }
 0x525   :  { %2213 = vmatprep.subr.bf16.mxu0 %v267_v33 }
 0x526   :  { %2214 = vmatpush3.bf16.msra.mxu0 %v267_v33  ;;  %v2049_v33 = vld [vmem:[%s3106_s3 + $0x5] ss:$0 sm:$0xff] }
 0x527   :  { %2219 = vmatprep.subr.bf16.mxu0 %v2565_v15  ;;  %v2454_v34 = vpop.eup %2453 }
 0x528   :  { %v2456_v35 = vpop.eup %2455  ;;  %v261_v38 = vmul.f32 %v2454_v34, %v2450_v21 }
 0x529   :  { %v2458_v36 = vpop.eup %2457  ;;  %v258_v39 = vmul.f32 %v2456_v35, %v2448_v20 }
 0x52a   :  { %v260_v41 = vmul.f32 %v2458_v36, %v2446_v18  ;;  %v2414_v18 = vld [vmem:[%s3105_s2 + $0x28] sm:$0xff]  }
 0x52b   :  { %v2460_v37 = vpop.eup %2459 }
 0x52c   :  { %v259_v40 = vmul.f32 %v2460_v37, %v2452_v24  ;;  %v263_v43 = vpack.c.bf16 %v261_v38, %v260_v41  ;;  %v2415_v38 = vld [vmem:[%s3105_s2 + $0x30] sm:$0xff]   ;;  %v2418_v41 = vld [vmem:[%s3105_s2 + $0x48] sm:$0xff]  }
 0x52e   :  { %v262_v42 = vpack.c.bf16 %v259_v40, %v258_v39  ;;  %v2416_v39 = vld [vmem:[%s3105_s2 + $0x38] sm:$0xff]   ;;  %v2417_v40 = vld [vmem:[%s3105_s2 + $0x40] sm:$0xff]  }
 0x530   :  { %2215 = vmatprep.mubr.msk.bf16.mxu0 %vm22_vm0, %v262_v42  ;;  %v2419_v42 = vld [vmem:[%s3105_s2 + $0x50] sm:$0xff]  }
 0x531   :  { %2216 = vmatmul.mubr.msk.bf16.vlgmr.msra.gmra.mrb[4].mxu0 %vm22_vm0, %v263_v43  ;;  %v2420_v43 = vld [vmem:[%s3105_s2 + $0x58] sm:$0xff]  }
 0x532   :  { %2223 = vmatprep.mubr.msk.bf16.mxu0 %vm2566_vm1, %v2565_v15  ;;  %2220 = vmatpush3.bf16.msra.mxu0 %v2411_v44  ;;  %v2421_v44 = vld [vmem:[%s3105_s2 + $0x60] sm:$0xff]  }
 0x533   :  { %2221 = vmatprep.subr.bf16.mxu0 %v2565_v15 }
 0x536   :  { %2222 = vmatpush3.bf16.msra.mxu0 %v2412_v45  ;;  %v2422_v45 = vld [vmem:[%s3105_s2 + $0x68] sm:$0xff]  }
 0x537   :  { %2235 = vmatprep.subr.bf16.mxu0 %v2565_v15 }
 0x604   :  { %v2217_v46 = vpop.f32.mrb[4].mxu0 }
 0x605   :  { %v310_v47 = vpop.f32.mrb[5].mxu0 }
 0x606   :  { %v2218_v48 = vpop.f32.mrb[6].mxu0 }
 0x607   :  { %v313_v49 = vpop.f32.mrb[7].mxu0 }
 0x608   :  { %v2399_v50 = vpack.i.bf16 %v2218_v48, %v313_v49 }
 0x60a   :  { %2400 = vrot.lane.b32.xlu1 %v2399_v50, %s2570_s16 }
 0x67c   :  { %v2401_v52 = vpop.permute.xlu1 %2400 }
 0x67d   :  { %v2403_v53 = vunpack.i.h.bf16 %v2401_v52  ;;  %v2402_v54 = vunpack.i.l.bf16 %v2401_v52 }
 0x67f   :  { %v334_v55 = vsel %vm148_vm2, %v2217_v46, %v2403_v53  ;;  %v333_v58 = vsel %vm148_vm2, %v310_v47, %v2402_v54  ;;  %v2050_v46 = vld [vmem:[%s3106_s3 + $0x6] ss:$0 sm:$0xff] }
 0x680   :  { %v335_v59 = vpack.c.bf16 %v334_v55, %v333_v58 }
 0x682   :  { %2224 = vmatmul.mubr.msk.bf16.vlgmr.msra.gmra.mrb[8].mxu0 %vm22_vm0, %v335_v59 }
 0x683   :  { %2251 = vmatprep.mubr.msk.bf16.mxu0 %vm2566_vm1, %v2565_v15  ;;  %2236 = vmatpush3.bf16.msra.mxu0 %v2415_v38 }
 0x684   :  { %2237 = vmatprep.subr.bf16.mxu0 %v2565_v15 }
 0x687   :  { %2238 = vmatpush3.bf16.msra.mxu0 %v2416_v39 }
 0x688   :  { %2239 = vmatprep.subr.bf16.mxu0 %v2565_v15 }
 0x68b   :  { %2240 = vmatpush3.bf16.msra.mxu0 %v2417_v40 }
 0x68c   :  { %2241 = vmatprep.subr.bf16.mxu0 %v2565_v15 }
 0x68f   :  { %2242 = vmatpush3.bf16.msra.mxu0 %v2418_v41 }
 0x690   :  { %2243 = vmatprep.subr.bf16.mxu0 %v2565_v15 }
 0x693   :  { %2244 = vmatpush3.bf16.msra.mxu0 %v2419_v42 }
 0x694   :  { %2245 = vmatprep.subr.bf16.mxu0 %v2565_v15 }
 0x697   :  { %2246 = vmatpush3.bf16.msra.mxu0 %v2420_v43  ;;  %v2063_v43 = vld [vmem:[%s3106_s3 + $0x8] ss:$0 sm:$0xff] }
 0x698   :  { %2247 = vmatprep.subr.bf16.mxu0 %v2565_v15 }
 0x69b   :  { %2248 = vmatpush3.bf16.msra.mxu0 %v2421_v44 }
 0x69c   :  { %2249 = vmatprep.subr.bf16.mxu0 %v2565_v15 }
 0x69f   :  { %2250 = vmatpush3.bf16.msra.mxu0 %v2422_v45 }
 0x6a0   :  { %2279 = vmatprep.subr.bf16.mxu0 %v2565_v15 }
 0x755   :  { %v394_v61 = vpop.f32.mrb[8].mxu0 }
 0x756   :  { %v395_v62 = vadd.f32 %v2044_v60, %v394_v61  ;;  %v2225_v63 = vpop.f32.mrb[9].mxu0 }
 0x757   :  { %v397_v1 = vpop.f32.mrb[10].mxu0 }
 0x758   :  { %v398_v2 = vadd.f32 %v2044_v60, %v397_v1  ;;  %v2226_v3 = vpop.f32.mrb[11].mxu0  ;;  %v401_v4 = vadd.f32 %v395_v62, %v2624_v31 }
 0x75a   :  { %v405_v5 = vsel %vm22_vm0, %v401_v4, 0.0  ;;  %v402_v6 = vadd.f32 %v398_v2, %v2626_v32  ;;  %v2413_v32 = vld [vmem:[%s3105_s2 + $0x20] sm:$0xff]  }
 0x75b   :  { %406 = vadd.xlane.f32.xlu1 %v405_v5  ;;  %2228 = vmatpush3.bf16.msra.mxu1 %v2413_v32 }
 0x75c   :  { %v408_v7 = vsel %vm22_vm0, %v402_v6, 0.0  ;;  %2229 = vmatprep.subr.bf16.mxu1 %v2565_v15 }
 0x75d   :  { %409 = vadd.xlane.f32.xlu0 %v408_v7 }
 0x75f   :  { %2230 = vmatpush3.bf16.msra.mxu1 %v2414_v18 }
 0x760   :  { %2255 = vmatprep.subr.bf16.mxu1 %v2565_v15 }
 0x7e8   :  { %v407_v8 = vpop.xlane.xlu1 %406 }
 0x7e9   :  { %v411_v9 = vmul.f32 0.03125, %v407_v8 }
 0x7ea   :  { %v410_v10 = vpop.xlane.xlu0 %409 }
 0x7eb   :  { %v413_v11 = vsub.f32 %v401_v4, %v411_v9  ;;  %v412_v12 = vmul.f32 0.03125, %v410_v10 }
 0x7ed   :  { %v414_v13 = vsub.f32 %v402_v6, %v412_v12  ;;  %v415_v14 = vmul.f32 %v413_v11, %v413_v11  ;;  %v2054_v12 = vld [vmem:[%s3106_s3 + $0x7] ss:$0 sm:$0xff] }
 0x7ef   :  { %v417_v16 = vsel %vm22_vm0, %v415_v14, 0.0  ;;  %v416_v17 = vmul.f32 %v414_v13, %v414_v13 }
 0x7f0   :  { %418 = vadd.xlane.f32.xlu0 %v417_v16 }
 0x7f1   :  { %v420_v31 = vsel %vm22_vm0, %v416_v17, 0.0 }
 0x7f4   :  { %421 = vadd.xlane.f32.xlu0 %v420_v31 }
 0x87d   :  { %v419_v19 = vpop.xlane.xlu0 %418 }
 0x87e   :  { %v423_v20 = vmul.f32 0.03125, %v419_v19 }
 0x880   :  { %v425_v21 = vadd.f32 1e-12, %v423_v20 }
 0x881   :  { %v422_v22 = vpop.xlane.xlu0 %421 }
 0x882   :  { %2461 = vrsqrt.f32 %v425_v21  ;;  %v424_v23 = vmul.f32 0.03125, %v422_v22 }
 0x884   :  { %v426_v24 = vadd.f32 1e-12, %v424_v23 }
 0x886   :  { %2463 = vrsqrt.f32 %v426_v24 }
 0x88c   :  { %v2462_v25 = vpop.eup %2461 }
 0x88d   :  { %v429_v26 = vmul.f32 %v2462_v25, %v413_v11 }
 0x88f   :  { %v435_v29 = vmul.f32 %v2048_v27, %v429_v26 }
 0x890   :  { %v2464_v28 = vpop.eup %2463 }
 0x891   :  { %v430_v30 = vmul.f32 %v2464_v28, %v414_v13  ;;  %v2733_v35 = vadd.f32 %v2049_v33, %v435_v29 }
 0x893   :  { %v436_v34 = vmul.f32 %v2048_v27, %v430_v30 }
 0x895   :  { %v2735_v36 = vadd.f32 %v2049_v33, %v436_v34  ;;  %v2423_v34 = vld [vmem:[%s3105_s2 + $0x70] sm:$0xff]  }
 0x897   :  { %v443_v37 = vpack.c.bf16 %v2735_v36, %v2733_v35 }
 0x899   :  { %2232 = vmatmul.mubr.msk.bf16.vlgmr.msra.gmra.mrb[4].mxu1 %vm22_vm0, %v443_v37 }
 0x89a   :  { %2259 = vmatprep.mubr.msk.bf16.mxu1 %vm2566_vm1, %v2565_v15  ;;  %2256 = vmatpush3.bf16.msra.mxu1 %v2423_v34 }
 0x89b   :  { %2257 = vmatprep.subr.bf16.mxu1 %v2565_v15 }
 0x96c   :  { %v502_v47 = vpop.f32.mrb[4].mxu1 }
 0x96d   :  { %v503_v48 = vadd.f32 %v2050_v46, %v502_v47  ;;  %v2233_v49 = vpop.f32.mrb[5].mxu1 }
 0x96e   :  { %v505_v50 = vpop.f32.mrb[6].mxu1 }
 0x96f   :  { %v511_v52 = vmul.f32 0.044715, %v503_v48  ;;  %v506_v53 = vadd.f32 %v2050_v46, %v505_v50  ;;  %v2234_v54 = vpop.f32.mrb[7].mxu1  ;;  %v509_v6 = vmul.f32 0.5, %v503_v48 }
 0x970   :  { %v2065_v54 = vld [vmem:[%s3106_s3 + $0xa] ss:$0 sm:$0xff] }
 0x971   :  { %v513_v55 = vmul.f32 %v511_v52, %v503_v48  ;;  %v512_v58 = vmul.f32 0.044715, %v506_v53  ;;  %v510_v7 = vmul.f32 0.5, %v506_v53 }
 0x973   :  { %v515_v59 = vmul.f32 %v513_v55, %v503_v48  ;;  %v514_v60 = vmul.f32 %v512_v58, %v506_v53 }
 0x975   :  { %v517_v61 = vadd.f32 %v515_v59, %v503_v48  ;;  %v516_v62 = vmul.f32 %v514_v60, %v506_v53  ;;  %v2064_v48 = vld [vmem:[%s3106_s3 + $0x9] ss:$0 sm:$0xff] }
 0x977   :  { %v519_v63 = vmul.f32 0.7978846, %v517_v61  ;;  %v518_v1 = vadd.f32 %v516_v62, %v506_v53 }
 0x979   :  { %2465 = vtanh.f32 %v519_v63  ;;  %v520_v2 = vmul.f32 0.7978846, %v518_v1 }
 0x97b   :  { %2467 = vtanh.f32 %v520_v2 }
 0x983   :  { %v2466_v3 = vpop.eup %2465 }
 0x984   :  { %v523_v4 = vadd.f32 1.0, %v2466_v3 }
 0x985   :  { %v2468_v5 = vpop.eup %2467 }
 0x986   :  { %v524_v8 = vadd.f32 1.0, %v2468_v5  ;;  %v525_v9 = vmul.f32 %v523_v4, %v509_v6 }
 0x988   :  { %v526_v10 = vmul.f32 %v524_v8, %v510_v7 }
 0x98a   :  { %v527_v11 = vpack.c.bf16 %v526_v10, %v525_v9 }
 0x98c   :  { %2252 = vmatmul.mubr.bf16.vlgmr.msra.gmra.mrb[12].mxu0 %v527_v11 }
 0x98d   :  { %2283 = vmatprep.mubr.msk.bf16.mxu0 %vm2566_vm1, %v2565_v15 }
 0xa5f   :  { %v631_v13 = vpop.f32.mrb[12].mxu0 }
 0xa60   :  { %v632_v14 = vadd.f32 %v2054_v12, %v631_v13  ;;  %v2253_v16 = vpop.f32.mrb[13].mxu0 }
 0xa61   :  { %v634_v17 = vpop.f32.mrb[14].mxu0 }
 0xa62   :  { %v635_v31 = vadd.f32 %v2054_v12, %v634_v17  ;;  %v2254_v32 = vpop.f32.mrb[15].mxu0  ;;  %v638_v18 = vadd.f32 %v632_v14, %v2733_v35  ;;  %v2424_v35 = vld [vmem:[%s3105_s2 + $0x78] sm:$0xff]  }
 0xa63   :  { %2258 = vmatpush3.bf16.msra.mxu1 %v2424_v35 }
 0xa64   :  { %v642_v19 = vsel %vm22_vm0, %v638_v18, 0.0  ;;  %v639_v20 = vadd.f32 %v635_v31, %v2735_v36 }
 0xa65   :  { %643 = vadd.xlane.f32.xlu1 %v642_v19 }
 0xa66   :  { %v645_v21 = vsel %vm22_vm0, %v639_v20, 0.0 }
 0xa67   :  { %646 = vadd.xlane.f32.xlu0 %v645_v21 }
 0xaf2   :  { %v644_v22 = vpop.xlane.xlu1 %643 }
 0xaf3   :  { %v648_v23 = vmul.f32 0.03125, %v644_v22 }
 0xaf4   :  { %v647_v24 = vpop.xlane.xlu0 %646 }
 0xaf5   :  { %v650_v25 = vsub.f32 %v638_v18, %v648_v23  ;;  %v649_v26 = vmul.f32 0.03125, %v647_v24 }
 0xaf7   :  { %v651_v27 = vsub.f32 %v639_v20, %v649_v26  ;;  %v652_v28 = vmul.f32 %v650_v25, %v650_v25 }
 0xaf9   :  { %v654_v29 = vsel %vm22_vm0, %v652_v28, 0.0  ;;  %v653_v30 = vmul.f32 %v651_v27, %v651_v27 }
 0xafa   :  { %655 = vadd.xlane.f32.xlu1 %v654_v29 }
 0xafb   :  { %v657_v33 = vsel %vm22_vm0, %v653_v30, 0.0 }
 0xafc   :  { %658 = vadd.xlane.f32.xlu0 %v657_v33 }
 0xb87   :  { %v656_v36 = vpop.xlane.xlu1 %655 }
 0xb88   :  { %v660_v37 = vmul.f32 0.03125, %v656_v36 }
 0xb89   :  { %v659_v38 = vpop.xlane.xlu0 %658 }
 0xb8a   :  { %v662_v39 = vadd.f32 1e-12, %v660_v37  ;;  %v661_v40 = vmul.f32 0.03125, %v659_v38 }
 0xb8c   :  { %2469 = vrsqrt.f32 %v662_v39  ;;  %v663_v41 = vadd.f32 1e-12, %v661_v40 }
 0xb8e   :  { %2471 = vrsqrt.f32 %v663_v41 }
 0xb96   :  { %v2470_v42 = vpop.eup %2469 }
 0xb97   :  { %v666_v44 = vmul.f32 %v2470_v42, %v650_v25 }
 0xb98   :  { %v2472_v45 = vpop.eup %2471 }
 0xb99   :  { %v672_v46 = vmul.f32 %v2063_v43, %v666_v44  ;;  %v667_v47 = vmul.f32 %v2472_v45, %v651_v27 }
 0xb9b   :  { %v673_v49 = vmul.f32 %v2063_v43, %v667_v47  ;;  %v2801_v50 = vadd.f32 %v2064_v48, %v672_v46 }
 0xb9d   :  { %v2803_v52 = vadd.f32 %v2064_v48, %v673_v49 }
 0xb9f   :  { %v680_v53 = vpack.c.bf16 %v2803_v52, %v2801_v50 }
 0xba1   :  { %2260 = vmatmul.mubr.msk.bf16.vlgmr.msra.gmra.mrb[8].mxu1 %vm22_vm0, %v680_v53 }
 0xc74   :  { %v739_v55 = vpop.f32.mrb[8].mxu1 }
 0xc75   :  { %v740_v58 = vadd.f32 %v2065_v54, %v739_v55  ;;  %v2261_v59 = vpop.f32.mrb[9].mxu1 }
 0xc76   :  { %v742_v60 = vpop.f32.mrb[10].mxu1 }
 0xc77   :  { %v743_v61 = vadd.f32 %v2065_v54, %v742_v60  ;;  %747 = vrot.lane.b32.xlu1 %v740_v58, %s2567_s28  ;;  %v2262_v62 = vpop.f32.mrb[11].mxu1 }
 0xc78   :  { %v2425_v62 = vld [vmem:[%s3105_s2 + $0x80] sm:$0xff]  }
 0xc79   :  { %751 = vrot.lane.b32.xlu0 %v743_v61, %s2567_s28  ;;  %2280 = vmatpush3.bf16.msra.mxu0 %v2425_v62 }
 0xc7a   :  { %2281 = vmatprep.subr.bf16.mxu0 %v2565_v15 }
 0xce9   :  { %v748_v63 = vpop.permute.xlu1 %747 }
 0xcea   :  { %v754_v1 = vpack.c.bf16 %v748_v63, %v740_v58  ;;  %v2426_v63 = vld [vmem:[%s3105_s2 + $0x88] sm:$0xff]  }
 0xceb   :  { %v752_v2 = vpop.permute.xlu0 %751  ;;  %2282 = vmatpush3.bf16.msra.mxu0 %v2426_v63 }
 0xcec   :  { %758 = vrot.lane.b32.xlu1 %v754_v1, %s2568_s29  ;;  %2267 = vmatprep.mubr.msk.bf16.mxu1 %vm148_vm2, %v754_v1  ;;  %v755_v3 = vpack.c.bf16 %v752_v2, %v743_v61 }
 0xced   :  { %2295 = vmatprep.subr.bf16.mxu0 %v2565_v15 }
 0xcf0   :  { %760 = vrot.lane.b32.xlu1 %v755_v3, %s2568_s29 }
 0xd5e   :  { %v759_v4 = vpop.permute.xlu1 %758 }
 0xd5f   :  { %v769_v5 = vsel %vm148_vm2, %v759_v4, 0  ;;  %2389 = vmatprep.subr.msk.bf16.mxu1 %vm148_vm2, %v759_v4 }
 0xd60   :  { %2264 = vmatpush3.bf16.xpose.msra.mxu1 %v769_v5 }
 0xd62   :  { %v761_v6 = vpop.permute.xlu1 %760 }
 0xd63   :  { %2390 = vmatprep.subr.msk.bf16.mxu1 %vm148_vm2, %v761_v6  ;;  %v772_v7 = vsel %vm148_vm2, %v761_v6, 0 }
 0xd68   :  { %2266 = vmatpush3.bf16.xpose.msra.mxu1 %v772_v7 }
 0xd6f   :  { %2268 = vmatmul.mubr.msk.bf16.vlgmr.msra.gmra.mrb[12].mxu1 %vm148_vm2, %v755_v3 }
 0xe42   :  { %v2269_v8 = vpop.f32.mrb[12].mxu1 }
 0xe43   :  { %v825_v9 = vmul.f32 0.25, %v2269_v8  ;;  %v808_v10 = vpop.f32.mrb[13].mxu1 }
 0xe44   :  { %v823_v11 = vmul.f32 0.25, %v808_v10  ;;  %v2270_v12 = vpop.f32.mrb[14].mxu1 }
 0xe45   :  { %v811_v13 = vpop.f32.mrb[15].mxu1  ;;  %v829_v14 = vadd.f32 %v825_v9, %v2668_v57  ;;  %v826_v31 = vmul.f32 0.25, %v2270_v12  ;;  %v2073_v12 = vld [vmem:[%s3106_s3 + $0xb] ss:$0 sm:$0xff] }
 0xe46   :  { %v824_v16 = vmul.f32 0.25, %v811_v13  ;;  %v827_v17 = vadd.f32 %v823_v11, %v2658_v51 }
 0xe47   :  { %v837_v32 = vsel %vm22_vm0, %v829_v14, -inf  ;;  %v830_v21 = vadd.f32 %v826_v31, %v2677_v0 }
 0xe48   :  { %838 = vmax.xlane.f32.xlu0 %v837_v32  ;;  %v831_v18 = vsel %vm22_vm0, %v827_v17, -inf  ;;  %v828_v19 = vadd.f32 %v824_v16, %v2663_v56 }
 0xe49   :  { %832 = vmax.xlane.f32.xlu1 %v831_v18  ;;  %v840_v22 = vsel %vm22_vm0, %v830_v21, -inf }
 0xe4a   :  { %v834_v20 = vsel %vm22_vm0, %v828_v19, -inf }
 0xe4c   :  { %835 = vmax.xlane.f32.xlu0 %v834_v20 }
 0xe50   :  { %841 = vmax.xlane.f32.xlu0 %v840_v22 }
 0xed5   :  { %v839_v57 = vpop.xlane.xlu0 %838 }
 0xed6   :  { %v845_v23 = vsub.f32 %v829_v14, %v839_v57  ;;  %v833_v51 = vpop.xlane.xlu1 %832 }
 0xed7   :  { %v843_v24 = vsub.f32 %v827_v17, %v833_v51 }
 0xed8   :  { %v851_v25 = vmul.f32 1.442695, %v845_v23 }
 0xed9   :  { %v847_v26 = vmul.f32 1.442695, %v843_v24  ;;  %v836_v27 = vpop.xlane.xlu0 %835 }
 0xeda   :  { %2473 = vpow2.f32 %v851_v25  ;;  %v844_v28 = vsub.f32 %v828_v19, %v836_v27 }
 0xedb   :  { %2475 = vpow2.f32 %v847_v26 }
 0xedc   :  { %v849_v30 = vmul.f32 1.442695, %v844_v28 }
 0xedd   :  { %v842_v56 = vpop.xlane.xlu0 %841 }
 0xede   :  { %v846_v29 = vsub.f32 %v830_v21, %v842_v56  ;;  %v2428_v56 = vld [vmem:[%s3105_s2 + $0x98] sm:$0xff]  }
 0xee0   :  { %v853_v33 = vmul.f32 1.442695, %v846_v29 }
 0xee2   :  { %2477 = vpow2.f32 %v853_v33 }
 0xee3   :  { %2479 = vpow2.f32 %v849_v30 }
 0xee4   :  { %v2474_v0 = vpop.eup %2473 }
 0xee5   :  { %v861_v34 = vsel %vm22_vm0, %v2474_v0, 0.0  ;;  %v2476_v35 = vpop.eup %2475 }
 0xee6   :  { %862 = vadd.xlane.f32.xlu1 %v861_v34  ;;  %v855_v36 = vsel %vm22_vm0, %v2476_v35, 0.0 }
 0xeea   :  { %856 = vadd.xlane.f32.xlu1 %v855_v36 }
 0xeec   :  { %v2478_v37 = vpop.eup %2477 }
 0xeed   :  { %v864_v38 = vsel %vm22_vm0, %v2478_v37, 0.0  ;;  %v2480_v39 = vpop.eup %2479 }
 0xeee   :  { %865 = vadd.xlane.f32.xlu0 %v864_v38  ;;  %v858_v40 = vsel %vm22_vm0, %v2480_v39, 0.0 }
 0xef2   :  { %859 = vadd.xlane.f32.xlu0 %v858_v40 }
 0xefb   :  { %877 = vrot.lane.b32.xlu1 %v754_v1, %s2569_s1 }
 0xf08   :  { %879 = vrot.lane.b32.xlu0 %v755_v3, %s2569_s1 }
 0xf73   :  { %v863_v41 = vpop.xlane.xlu1 %862 }
 0xf77   :  { %v857_v42 = vpop.xlane.xlu1 %856 }
 0xf7b   :  { %v878_v43 = vpop.permute.xlu1 %877  ;;  %v866_v44 = vpop.xlane.xlu0 %865 }
 0xf7c   :  { %2271 = vmatprep.subr.bf16.mxu1 %v878_v43  ;;  %2481 = vrcp.f32 %v866_v44 }
 0xf7d   :  { %2272 = vmatpush3.bf16.msra.mxu1 %v878_v43  ;;  %2483 = vrcp.f32 %v857_v42  ;;  %v2078_v42 = vld [vmem:[%s3106_s3 + $0xd] ss:$0 sm:$0xff] }
 0xf7e   :  { %2485 = vrcp.f32 %v863_v41 }
 0xf7f   :  { %v860_v45 = vpop.xlane.xlu0 %859 }
 0xf80   :  { %2487 = vrcp.f32 %v860_v45 }
 0xf83   :  { %v880_v46 = vpop.permute.xlu0 %879 }
 0xf84   :  { %2273 = vmatprep.subr.bf16.mxu1 %v880_v46 }
 0xf85   :  { %2274 = vmatpush3.bf16.msra.mxu1 %v880_v46 }
 0xf86   :  { %2287 = vmatprep.subr.bf16.mxu1 %v2565_v15  ;;  %v2482_v47 = vpop.eup %2481 }
 0xf87   :  { %v2484_v48 = vpop.eup %2483  ;;  %v874_v54 = vmul.f32 %v2482_v47, %v2478_v37  ;;  %v2077_v37 = vld [vmem:[%s3106_s3 + $0xc] ss:$0 sm:$0xff]  ;;  %v2429_v47 = vld [vmem:[%s3105_s2 + $0xa0] sm:$0xff]  }
 0xf88   :  { %v2486_v49 = vpop.eup %2485  ;;  %v871_v55 = vmul.f32 %v2484_v48, %v2476_v35  ;;  %v2430_v48 = vld [vmem:[%s3105_s2 + $0xa8] sm:$0xff]  }
 0xf89   :  { %v873_v59 = vmul.f32 %v2486_v49, %v2474_v0  ;;  %v2431_v49 = vld [vmem:[%s3105_s2 + $0xb0] sm:$0xff]  }
 0xf8a   :  { %v2488_v53 = vpop.eup %2487 }
 0xf8b   :  { %v872_v58 = vmul.f32 %v2488_v53, %v2480_v39  ;;  %v876_v61 = vpack.c.bf16 %v874_v54, %v873_v59  ;;  %v2432_v53 = vld [vmem:[%s3105_s2 + $0xb8] sm:$0xff]   ;;  %v2433_v54 = vld [vmem:[%s3105_s2 + $0xc0] sm:$0xff]  }
 0xf8c   :  { %v2436_v59 = vld [vmem:[%s3105_s2 + $0xd8] sm:$0xff]  }
 0xf8d   :  { %v875_v60 = vpack.c.bf16 %v872_v58, %v871_v55  ;;  %v2434_v55 = vld [vmem:[%s3105_s2 + $0xc8] sm:$0xff]   ;;  %v2435_v58 = vld [vmem:[%s3105_s2 + $0xd0] sm:$0xff]  }
 0xf8f   :  { %2275 = vmatprep.mubr.msk.bf16.mxu1 %vm22_vm0, %v875_v60  ;;  %v2079_v60 = vld [vmem:[%s3106_s3 + $0xe] ss:$0 sm:$0xff] }
 0xf90   :  { %2276 = vmatmul.mubr.msk.bf16.vlgmr.msra.gmra.mrb[16].mxu1 %vm22_vm0, %v876_v61 }
 0xf91   :  { %2291 = vmatprep.mubr.msk.bf16.mxu1 %vm2566_vm1, %v2565_v15 }
0x1063   :  { %v2277_v1 = vpop.f32.mrb[16].mxu1 }
0x1064   :  { %v923_v2 = vpop.f32.mrb[17].mxu1 }
0x1065   :  { %v2278_v3 = vpop.f32.mrb[18].mxu1 }
0x1066   :  { %v926_v4 = vpop.f32.mrb[19].mxu1 }
0x1067   :  { %v2404_v5 = vpack.i.bf16 %v2278_v3, %v926_v4 }
0x1069   :  { %2405 = vrot.lane.b32.xlu1 %v2404_v5, %s2570_s16 }
0x10db   :  { %v2406_v6 = vpop.permute.xlu1 %2405 }
0x10dc   :  { %v2408_v7 = vunpack.i.h.bf16 %v2406_v6  ;;  %v2407_v8 = vunpack.i.l.bf16 %v2406_v6 }
0x10de   :  { %v947_v9 = vsel %vm148_vm2, %v2277_v1, %v2408_v7  ;;  %v946_v10 = vsel %vm148_vm2, %v923_v2, %v2407_v8 }
0x10df   :  { %v948_v11 = vpack.c.bf16 %v947_v9, %v946_v10 }
0x10e1   :  { %2284 = vmatmul.mubr.msk.bf16.vlgmr.msra.gmra.mrb[16].mxu0 %vm22_vm0, %v948_v11 }
0x10e2   :  { %2311 = vmatprep.mubr.msk.bf16.mxu0 %vm2566_vm1, %v2565_v15  ;;  %2296 = vmatpush3.bf16.msra.mxu0 %v2429_v47 }
0x10e3   :  { %2297 = vmatprep.subr.bf16.mxu0 %v2565_v15 }
0x10e6   :  { %2298 = vmatpush3.bf16.msra.mxu0 %v2430_v48 }
0x10e7   :  { %2299 = vmatprep.subr.bf16.mxu0 %v2565_v15 }
0x10ea   :  { %2300 = vmatpush3.bf16.msra.mxu0 %v2431_v49 }
0x10eb   :  { %2301 = vmatprep.subr.bf16.mxu0 %v2565_v15 }
0x10ee   :  { %2302 = vmatpush3.bf16.msra.mxu0 %v2432_v53  ;;  %v2092_v53 = vld [vmem:[%s3106_s3 + $0x10] ss:$0 sm:$0xff] }
0x10ef   :  { %2303 = vmatprep.subr.bf16.mxu0 %v2565_v15 }
0x10f2   :  { %2304 = vmatpush3.bf16.msra.mxu0 %v2433_v54 }
0x10f3   :  { %2305 = vmatprep.subr.bf16.mxu0 %v2565_v15 }
0x10f6   :  { %2306 = vmatpush3.bf16.msra.mxu0 %v2434_v55 }
0x10f7   :  { %2307 = vmatprep.subr.bf16.mxu0 %v2565_v15 }
0x10fa   :  { %2308 = vmatpush3.bf16.msra.mxu0 %v2435_v58 }
0x10fb   :  { %2309 = vmatprep.subr.bf16.mxu0 %v2565_v15 }
0x10fe   :  { %2310 = vmatpush3.bf16.msra.mxu0 %v2436_v59 }
0x10ff   :  { %2347 = vmatprep.subr.bf16.mxu0 %v2565_v15 }
0x11b4   :  { %v1007_v13 = vpop.f32.mrb[16].mxu0 }
0x11b5   :  { %v1008_v14 = vadd.f32 %v2073_v12, %v1007_v13  ;;  %v2285_v16 = vpop.f32.mrb[17].mxu0 }
0x11b6   :  { %v1010_v17 = vpop.f32.mrb[18].mxu0 }
0x11b7   :  { %v1011_v31 = vadd.f32 %v2073_v12, %v1010_v17  ;;  %v2286_v32 = vpop.f32.mrb[19].mxu0  ;;  %v1014_v18 = vadd.f32 %v1008_v14, %v2801_v50 }
0x11b9   :  { %v1018_v19 = vsel %vm22_vm0, %v1014_v18, 0.0  ;;  %v1015_v20 = vadd.f32 %v1011_v31, %v2803_v52  ;;  %v2427_v52 = vld [vmem:[%s3105_s2 + $0x90] sm:$0xff]  }
0x11ba   :  { %1019 = vadd.xlane.f32.xlu1 %v1018_v19  ;;  %2288 = vmatpush3.bf16.msra.mxu1 %v2427_v52 }
0x11bb   :  { %v1021_v21 = vsel %vm22_vm0, %v1015_v20, 0.0  ;;  %2289 = vmatprep.subr.bf16.mxu1 %v2565_v15 }
0x11bc   :  { %1022 = vadd.xlane.f32.xlu0 %v1021_v21 }
0x11be   :  { %2290 = vmatpush3.bf16.msra.mxu1 %v2428_v56 }
0x11bf   :  { %2315 = vmatprep.subr.bf16.mxu1 %v2565_v15 }
0x1247   :  { %v1020_v22 = vpop.xlane.xlu1 %1019 }
0x1248   :  { %v1024_v57 = vmul.f32 0.03125, %v1020_v22  ;;  %v2083_v22 = vld [vmem:[%s3106_s3 + $0xf] ss:$0 sm:$0xff] }
0x1249   :  { %v1023_v23 = vpop.xlane.xlu0 %1022 }
0x124a   :  { %v1026_v51 = vsub.f32 %v1014_v18, %v1024_v57  ;;  %v1025_v24 = vmul.f32 0.03125, %v1023_v23 }
0x124c   :  { %v1027_v25 = vsub.f32 %v1015_v20, %v1025_v24  ;;  %v1028_v26 = vmul.f32 %v1026_v51, %v1026_v51 }
0x124e   :  { %v1030_v27 = vsel %vm22_vm0, %v1028_v26, 0.0  ;;  %v1029_v28 = vmul.f32 %v1027_v25, %v1027_v25 }
0x124f   :  { %1031 = vadd.xlane.f32.xlu0 %v1030_v27 }
0x1250   :  { %v1033_v50 = vsel %vm22_vm0, %v1029_v28, 0.0 }
0x1251   :  { %1034 = vadd.xlane.f32.xlu1 %v1033_v50 }
0x12dc   :  { %v1032_v29 = vpop.xlane.xlu0 %1031 }
0x12dd   :  { %v1036_v30 = vmul.f32 0.03125, %v1032_v29 }
0x12de   :  { %v1035_v33 = vpop.xlane.xlu1 %1034 }
0x12df   :  { %v1038_v0 = vadd.f32 1e-12, %v1036_v30  ;;  %v1037_v34 = vmul.f32 0.03125, %v1035_v33 }
0x12e1   :  { %2489 = vrsqrt.f32 %v1038_v0  ;;  %v1039_v35 = vadd.f32 1e-12, %v1037_v34 }
0x12e3   :  { %2491 = vrsqrt.f32 %v1039_v35 }
0x12eb   :  { %v2490_v36 = vpop.eup %2489 }
0x12ec   :  { %v1042_v38 = vmul.f32 %v2490_v36, %v1026_v51 }
0x12ed   :  { %v2492_v39 = vpop.eup %2491 }
0x12ee   :  { %v1048_v40 = vmul.f32 %v2077_v37, %v1042_v38  ;;  %v1043_v41 = vmul.f32 %v2492_v39, %v1027_v25  ;;  %v2437_v39 = vld [vmem:[%s3105_s2 + $0xe0] sm:$0xff]  }
0x12f0   :  { %v1049_v43 = vmul.f32 %v2077_v37, %v1043_v41  ;;  %v2877_v44 = vadd.f32 %v2078_v42, %v1048_v40  ;;  %v2438_v40 = vld [vmem:[%s3105_s2 + $0xe8] sm:$0xff]   ;;  %v2943_v41 = vld [vmem:[%s3105_s2 + $0xf0] sm:$0xff]  }
0x12f2   :  { %v2879_v45 = vadd.f32 %v2078_v42, %v1049_v43  ;;  %v2950_v42 = vld [vmem:[%s3105_s2 + $0xf8] sm:$0xff]  }
0x12f4   :  { %v1056_v46 = vpack.c.bf16 %v2879_v45, %v2877_v44 }
0x12f6   :  { %2292 = vmatmul.mubr.msk.bf16.vlgmr.msra.gmra.mrb[20].mxu1 %vm22_vm0, %v1056_v46 }
0x12f7   :  { %2319 = vmatprep.mubr.msk.bf16.mxu1 %vm2566_vm1, %v2565_v15  ;;  %2316 = vmatpush3.bf16.msra.mxu1 %v2437_v39 }
0x12f8   :  { %2317 = vmatprep.subr.bf16.mxu1 %v2565_v15 }
0x12fb   :  { %2318 = vmatpush3.bf16.msra.mxu1 %v2438_v40 }
0x12fc   :  { %2323 = vmatprep.subr.bf16.mxu1 %v2565_v15 }
0x13c9   :  { %v1115_v61 = vpop.f32.mrb[20].mxu1 }
0x13ca   :  { %v1116_v62 = vadd.f32 %v2079_v60, %v1115_v61  ;;  %v2293_v63 = vpop.f32.mrb[21].mxu1 }
0x13cb   :  { %v1118_v1 = vpop.f32.mrb[22].mxu1 }
0x13cc   :  { %v1124_v2 = vmul.f32 0.044715, %v1116_v62  ;;  %v1119_v3 = vadd.f32 %v2079_v60, %v1118_v1  ;;  %v2294_v4 = vpop.f32.mrb[23].mxu1  ;;  %v1122_v31 = vmul.f32 0.5, %v1116_v62  ;;  %v2093_v60 = vld [vmem:[%s3106_s3 + $0x11] ss:$0 sm:$0xff] }
0x13ce   :  { %v1126_v5 = vmul.f32 %v1124_v2, %v1116_v62  ;;  %v1125_v6 = vmul.f32 0.044715, %v1119_v3  ;;  %v1123_v32 = vmul.f32 0.5, %v1119_v3  ;;  %v2571_v2 = vmov 0  }
0x13d0   :  { %v1128_v7 = vmul.f32 %v1126_v5, %v1116_v62  ;;  %v1127_v8 = vmul.f32 %v1125_v6, %v1119_v3 }
0x13d2   :  { %v1130_v9 = vadd.f32 %v1128_v7, %v1116_v62  ;;  %v1129_v10 = vmul.f32 %v1127_v8, %v1119_v3 }
0x13d4   :  { %v1132_v11 = vmul.f32 0.7978846, %v1130_v9  ;;  %v1131_v12 = vadd.f32 %v1129_v10, %v1119_v3  ;;  %v2094_v3 = vld [vmem:[%s3106_s3 + $0x12] ss:$0 sm:$0xff]  ;;  %s2572_s3 = smov 32  }
0x13d6   :  { %2493 = vtanh.f32 %v1132_v11  ;;  %v1133_v13 = vmul.f32 0.7978846, %v1131_v12 }
0x13d8   :  { %2495 = vtanh.f32 %v1133_v13 }
0x13e0   :  { %v2494_v14 = vpop.eup %2493 }
0x13e1   :  { %v1136_v16 = vadd.f32 1.0, %v2494_v14 }
0x13e2   :  { %v2496_v17 = vpop.eup %2495 }
0x13e3   :  { %v1137_v18 = vadd.f32 1.0, %v2496_v17  ;;  %v1138_v19 = vmul.f32 %v1136_v16, %v1122_v31 }
0x13e5   :  { %v1139_v20 = vmul.f32 %v1137_v18, %v1123_v32 }
0x13e7   :  { %v1140_v21 = vpack.c.bf16 %v1139_v20, %v1138_v19 }
0x13e9   :  { %2312 = vmatmul.mubr.bf16.vlgmr.msra.gmra.mrb[20].mxu0 %v1140_v21 }
0x13ea   :  { %2351 = vmatprep.mubr.msk.bf16.mxu0 %vm2566_vm1, %v2565_v15  ;;  %2348 = vmatpush3.bf16.msra.mxu0 %v2943_v41 }
0x13eb   :  { %2349 = vmatprep.subr.bf16.mxu0 %v2565_v15 }
0x13ee   :  { %2350 = vmatpush3.bf16.msra.mxu0 %v2950_v42 }
0x13ef   :  { %2363 = vmatprep.subr.bf16.mxu0 %v2565_v15 }
0x14bc   :  { %v1244_v57 = vpop.f32.mrb[20].mxu0 }
0x14bd   :  { %v1245_v23 = vadd.f32 %v2083_v22, %v1244_v57  ;;  %v2313_v51 = vpop.f32.mrb[21].mxu0 }
0x14be   :  { %v1247_v24 = vpop.f32.mrb[22].mxu0 }
0x14bf   :  { %v1248_v25 = vadd.f32 %v2083_v22, %v1247_v24  ;;  %v2314_v26 = vpop.f32.mrb[23].mxu0  ;;  %v1251_v27 = vadd.f32 %v1245_v23, %v2877_v44 }
0x14c1   :  { %v1255_v28 = vsel %vm22_vm0, %v1251_v27, 0.0  ;;  %v1252_v50 = vadd.f32 %v1248_v25, %v2879_v45 }
0x14c2   :  { %1256 = vadd.xlane.f32.xlu0 %v1255_v28 }
0x14c3   :  { %v1258_v52 = vsel %vm22_vm0, %v1252_v50, 0.0 }
0x14c4   :  { %1259 = vadd.xlane.f32.xlu1 %v1258_v52 }
0x154f   :  { %v1257_v56 = vpop.xlane.xlu0 %1256 }
0x1550   :  { %v1261_v29 = vmul.f32 0.03125, %v1257_v56 }
0x1551   :  { %v1260_v30 = vpop.xlane.xlu1 %1259 }
0x1552   :  { %v1263_v33 = vsub.f32 %v1251_v27, %v1261_v29  ;;  %v1262_v0 = vmul.f32 0.03125, %v1260_v30 }
0x1554   :  { %v1264_v34 = vsub.f32 %v1252_v50, %v1262_v0  ;;  %v1265_v35 = vmul.f32 %v1263_v33, %v1263_v33 }
0x1556   :  { %v1267_v36 = vsel %vm22_vm0, %v1265_v35, 0.0  ;;  %v1266_v37 = vmul.f32 %v1264_v34, %v1264_v34 }
0x1557   :  { %1268 = vadd.xlane.f32.xlu0 %v1267_v36 }
0x1558   :  { %v1270_v38 = vsel %vm22_vm0, %v1266_v37, 0.0 }
0x1559   :  { %1271 = vadd.xlane.f32.xlu1 %v1270_v38 }
0x15e4   :  { %v1269_v43 = vpop.xlane.xlu0 %1268 }
0x15e5   :  { %v1273_v44 = vmul.f32 0.03125, %v1269_v43 }
0x15e6   :  { %v1272_v45 = vpop.xlane.xlu1 %1271 }
0x15e7   :  { %v1275_v46 = vadd.f32 1e-12, %v1273_v44  ;;  %v1274_v47 = vmul.f32 0.03125, %v1272_v45 }
0x15e9   :  { %2497 = vrsqrt.f32 %v1275_v46  ;;  %v1276_v48 = vadd.f32 1e-12, %v1274_v47 }
0x15eb   :  { %2499 = vrsqrt.f32 %v1276_v48 }
0x15f3   :  { %v2498_v49 = vpop.eup %2497 }
0x15f4   :  { %v1279_v54 = vmul.f32 %v2498_v49, %v1263_v33 }
0x15f5   :  { %v2500_v55 = vpop.eup %2499 }
0x15f6   :  { %v1285_v58 = vmul.f32 %v2092_v53, %v1279_v54  ;;  %v1280_v59 = vmul.f32 %v2500_v55, %v1264_v34 }
0x15f8   :  { %v1286_v61 = vmul.f32 %v2092_v53, %v1280_v59  ;;  %v1291_v62 = vadd.f32 %v2093_v60, %v1285_v58 }
0x15fa   :  { %v1292_v63 = vadd.f32 %v2093_v60, %v1286_v61 }
0x15fc   :  { %v1302_v1 = vpack.c.bf16 %v1292_v63, %v1291_v62 }
0x15fe   :  { %2320 = vmatmul.mubr.msk.bf16.vlgmr.msra.gmra.mrb[24].mxu1 %vm22_vm0, %v1302_v1 }
0x15ff   :  { %2324 = vmatpush3.bf16.msra.mxu1 %v2943_v41  ;;  %2327 = vmatprep.mubr.msk.bf16.mxu1 %vm2566_vm1, %v2565_v15 }
0x1600   :  { %2325 = vmatprep.subr.bf16.mxu1 %v2565_v15 }
0x1603   :  { %2326 = vmatpush3.bf16.msra.mxu1 %v2950_v42 }
0x1604   :  { %2331 = vmatprep.subr.bf16.mxu1 %v2565_v15 }
0x1606   :  { %2328 = vmatmul.mubr.bf16.vlgmr.msra.gmra.mrb[28].mxu1 %v2571_v2 }
0x1607   :  { %2332 = vmatpush3.bf16.msra.mxu1 %v2943_v41  ;;  %2335 = vmatprep.mubr.msk.bf16.mxu1 %vm2566_vm1, %v2565_v15 }
0x1608   :  { %2333 = vmatprep.subr.bf16.mxu1 %v2565_v15 }
0x160b   :  { %2334 = vmatpush3.bf16.msra.mxu1 %v2950_v42 }
0x160c   :  { %2339 = vmatprep.subr.bf16.mxu1 %v2565_v15 }
0x16d1   :  { %v1356_v4 = vpop.f32.mrb[24].mxu1 }
0x16d2   :  { %v1357_v5 = vadd.f32 %v2094_v3, %v1356_v4  ;;  %v2321_v6 = vpop.f32.mrb[25].mxu1 }
0x16d3   :  { %v1359_v7 = vpop.f32.mrb[26].mxu1 }
0x16d4   :  { %v1360_v8 = vadd.f32 %v2094_v3, %v1359_v7  ;;  %v2322_v9 = vpop.f32.mrb[27].mxu1  ;;  %v1369_v10 = vrot.slane %v1357_v5, 1  ;;  %v1372_v11 = vrot.slane %v1357_v5, 2  ;;  %v1377_v12 = vrot.slane %v1357_v5, 3 }
0x16d5   :  { %v1382_v13 = vrot.slane %v1357_v5, 4  ;;  %v1387_v14 = vrot.slane %v1357_v5, 5  ;;  %v1392_v16 = vrot.slane %v1357_v5, 6  ;;  %v1397_v17 = vrot.slane %v1357_v5, 7 }
0x16d6   :  { %v1364_v31 = vrot.slane %v1360_v8, 7  ;;  %v1371_v32 = vsel %vm1366_vm3, %v1369_v10, %v1360_v8  ;;  %v1374_v18 = vrot.slane %v1360_v8, 1  ;;  %v1379_v19 = vrot.slane %v1360_v8, 2 }
0x16d7   :  { %v1384_v20 = vrot.slane %v1360_v8, 3  ;;  %v1389_v21 = vrot.slane %v1360_v8, 4  ;;  %v1394_v22 = vrot.slane %v1360_v8, 5  ;;  %v1399_v57 = vrot.slane %v1360_v8, 6 }
0x16d8   :  { %v1367_v23 = vsel %vm1366_vm3, %v1357_v5, %v1364_v31  ;;  %v2979_v51 = vsel %vm1366_vm3, %v1372_v11, %v1374_v18  ;;  %v2982_v24 = vsel %vm1366_vm3, %v1377_v12, %v1379_v19 }
0x16d9   :  { %v1451_v25 = vpop.f32.mrb[28].mxu1  ;;  %v2985_v26 = vsel %vm1366_vm3, %v1382_v13, %v1384_v20  ;;  %v2988_v27 = vsel %vm1366_vm3, %v1387_v14, %v1389_v21  ;;  %v2991_v28 = vsel %vm1366_vm3, %v1392_v16, %v1394_v22  ;;  %v2994_v50 = vsel %vm1366_vm3, %v1397_v17, %v1399_v57 }
0x16da   :  { %v1457_v52 = vadd.f32 %v1451_v25, %v1367_v23  ;;  %v2329_v56 = vpop.f32.mrb[29].mxu1 }
0x16db   :  { %v1454_v29 = vpop.f32.mrb[30].mxu1 }
0x16dc   :  { %2501 = vtanh.f32 %v1457_v52  ;;  %v2330_v30 = vpop.f32.mrb[31].mxu1  ;;  %v2100_v0 = vmul.f32 -1.442695, %v1457_v52 }
0x16de   :  { %2503 = vpow2.f32 %v2100_v0 }
0x16e6   :  { %v2502_v33 = vpop.eup %2501 }
0x16e7   :  { %1467 = vrot.lane.b32.xlu0 %v2502_v33, %s2569_s1 }
0x16e8   :  { %v2504_v34 = vpop.eup %2503 }
0x16e9   :  { %v1461_v35 = vadd.f32 1.0, %v2504_v34 }
0x16eb   :  { %2505 = vrcp.f32 %v1461_v35 }
0x16f5   :  { %v2506_v36 = vpop.eup %2505 }
0x16f6   :  { %v1465_v39 = vmul.f32 0.0, %v2506_v36 }
0x1759   :  { %v1468_v37 = vpop.permute.xlu0 %1467 }
0x175a   :  { %v1470_v38 = vmul.f32 %v2506_v36, %v1468_v37 }
0x175c   :  { %1472 = vrot.lane.b32.xlu1 %v1470_v38, %s2572_s3 }
0x17ce   :  { %v1473_v40 = vpop.permute.xlu1 %1472 }
0x17cf   :  { %v1475_v43 = vadd.f32 %v1473_v40, %v1465_v39 }
0x17d1   :  { %2507 = vtanh.f32 %v1475_v43 }
0x17db   :  { %v2508_v44 = vpop.eup %2507 }
0x17dc   :  { %1478 = vrot.lane.b32.xlu1 %v2508_v44, %s2569_s1 }
0x184e   :  { %v1479_v45 = vpop.permute.xlu1 %1478 }
0x184f   :  { %v2999_v46 = vmul.f32 %v2506_v36, %v1479_v45 }
0x1851   :  { %v1482_v47 = vpack.c.bf16 %v2999_v46, %v2999_v46 }
0x1853   :  { %1484 = vrot.lane.b32.xlu1 %v1482_v47, %s2572_s3 }
0x18c5   :  { %v1485_v48 = vpop.permute.xlu1 %1484 }
0x18c6   :  { %2336 = vmatmul.mubr.msk.bf16.vlgmr.msra.gmra.mrb[32].mxu1 %vm22_vm0, %v1485_v48 }
0x18c7   :  { %2340 = vmatpush3.bf16.msra.mxu1 %v2943_v41  ;;  %2343 = vmatprep.mubr.msk.bf16.mxu1 %vm2566_vm1, %v2565_v15 }
0x18c8   :  { %2341 = vmatprep.subr.bf16.mxu1 %v2565_v15 }
0x18cb   :  { %2342 = vmatpush3.bf16.msra.mxu1 %v2950_v42 }
0x18cc   :  { %2355 = vmatprep.subr.bf16.mxu1 %v2565_v15 }
0x1999   :  { %v1523_v49 = vpop.f32.mrb[32].mxu1 }
0x199a   :  { %v1529_v53 = vadd.f32 %v1523_v49, %v1371_v32  ;;  %v2337_v54 = vpop.f32.mrb[33].mxu1 }
0x199b   :  { %v1526_v55 = vpop.f32.mrb[34].mxu1 }
0x199c   :  { %2509 = vtanh.f32 %v1529_v53  ;;  %v2338_v58 = vpop.f32.mrb[35].mxu1  ;;  %v2102_v60 = vmul.f32 -1.442695, %v1529_v53 }
0x199e   :  { %2511 = vpow2.f32 %v2102_v60 }
0x19a6   :  { %v2510_v59 = vpop.eup %2509 }
0x19a7   :  { %1539 = vrot.lane.b32.xlu0 %v2510_v59, %s2569_s1 }
0x19a8   :  { %v2512_v61 = vpop.eup %2511 }
0x19a9   :  { %v1533_v62 = vadd.f32 1.0, %v2512_v61 }
0x19ab   :  { %2513 = vrcp.f32 %v1533_v62 }
0x19b5   :  { %v2514_v63 = vpop.eup %2513 }
0x19b6   :  { %v1537_v3 = vmul.f32 %v2514_v63, %v1475_v43 }
0x1a19   :  { %v1540_v1 = vpop.permute.xlu0 %1539 }
0x1a1a   :  { %v1542_v2 = vmul.f32 %v2514_v63, %v1540_v1 }
0x1a1c   :  { %1544 = vrot.lane.b32.xlu1 %v1542_v2, %s2572_s3 }
0x1a8e   :  { %v1545_v4 = vpop.permute.xlu1 %1544 }
0x1a8f   :  { %v1547_v5 = vadd.f32 %v1545_v4, %v1537_v3 }
0x1a91   :  { %2515 = vtanh.f32 %v1547_v5 }
0x1a9b   :  { %v2516_v6 = vpop.eup %2515 }
0x1a9c   :  { %1550 = vrot.lane.b32.xlu0 %v2516_v6, %s2569_s1 }
0x1b0e   :  { %v1551_v7 = vpop.permute.xlu0 %1550 }
0x1b0f   :  { %v3014_v8 = vmul.f32 %v2514_v63, %v1551_v7 }
0x1b11   :  { %v1554_v9 = vpack.c.bf16 %v3014_v8, %v3014_v8 }
0x1b13   :  { %1556 = vrot.lane.b32.xlu1 %v1554_v9, %s2572_s3 }
0x1b85   :  { %v1557_v10 = vpop.permute.xlu1 %1556 }
0x1b86   :  { %2344 = vmatmul.mubr.msk.bf16.vlgmr.msra.gmra.mrb[36].mxu1 %vm22_vm0, %v1557_v10 }
0x1b87   :  { %2356 = vmatpush3.bf16.msra.mxu1 %v2943_v41  ;;  %2359 = vmatprep.mubr.msk.bf16.mxu1 %vm2566_vm1, %v2565_v15 }
0x1b88   :  { %2357 = vmatprep.subr.bf16.mxu1 %v2565_v15 }
0x1b8b   :  { %2358 = vmatpush3.bf16.msra.mxu1 %v2950_v42 }
0x1b8c   :  { %2371 = vmatprep.subr.bf16.mxu1 %v2565_v15 }
0x1c59   :  { %v1595_v11 = vpop.f32.mrb[36].mxu1 }
0x1c5a   :  { %v1601_v12 = vadd.f32 %v1595_v11, %v2979_v51  ;;  %v2345_v13 = vpop.f32.mrb[37].mxu1 }
0x1c5b   :  { %v1598_v14 = vpop.f32.mrb[38].mxu1 }
0x1c5c   :  { %2517 = vtanh.f32 %v1601_v12  ;;  %v2346_v16 = vpop.f32.mrb[39].mxu1  ;;  %v2104_v31 = vmul.f32 -1.442695, %v1601_v12 }
0x1c5e   :  { %2519 = vpow2.f32 %v2104_v31 }
0x1c66   :  { %v2518_v17 = vpop.eup %2517 }
0x1c67   :  { %1611 = vrot.lane.b32.xlu0 %v2518_v17, %s2569_s1 }
0x1c68   :  { %v2520_v32 = vpop.eup %2519 }
0x1c69   :  { %v1605_v18 = vadd.f32 1.0, %v2520_v32 }
0x1c6b   :  { %2521 = vrcp.f32 %v1605_v18 }
0x1c75   :  { %v2522_v19 = vpop.eup %2521 }
0x1c76   :  { %v1609_v22 = vmul.f32 %v2522_v19, %v1547_v5 }
0x1cd9   :  { %v1612_v20 = vpop.permute.xlu0 %1611 }
0x1cda   :  { %v1614_v21 = vmul.f32 %v2522_v19, %v1612_v20 }
0x1cdc   :  { %1616 = vrot.lane.b32.xlu1 %v1614_v21, %s2572_s3 }
0x1d4e   :  { %v1617_v57 = vpop.permute.xlu1 %1616 }
0x1d4f   :  { %v1619_v23 = vadd.f32 %v1617_v57, %v1609_v22 }
0x1d51   :  { %2523 = vtanh.f32 %v1619_v23 }
0x1d5b   :  { %v2524_v51 = vpop.eup %2523 }
0x1d5c   :  { %1622 = vrot.lane.b32.xlu0 %v2524_v51, %s2569_s1 }
0x1dce   :  { %v1623_v25 = vpop.permute.xlu0 %1622 }
0x1dcf   :  { %v3030_v52 = vmul.f32 %v2522_v19, %v1623_v25 }
0x1dd1   :  { %v1626_v56 = vpack.c.bf16 %v3030_v52, %v3030_v52 }
0x1dd3   :  { %1628 = vrot.lane.b32.xlu1 %v1626_v56, %s2572_s3 }
0x1e45   :  { %v1629_v29 = vpop.permute.xlu1 %1628 }
0x1e46   :  { %2352 = vmatmul.mubr.msk.bf16.vlgmr.msra.gmra.mrb[24].mxu0 %vm22_vm0, %v1629_v29 }
0x1e47   :  { %2364 = vmatpush3.bf16.msra.mxu0 %v2943_v41  ;;  %2367 = vmatprep.mubr.msk.bf16.mxu0 %vm2566_vm1, %v2565_v15 }
0x1e48   :  { %2365 = vmatprep.subr.bf16.mxu0 %v2565_v15 }
0x1e4b   :  { %2366 = vmatpush3.bf16.msra.mxu0 %v2950_v42 }
0x1e4c   :  { %2379 = vmatprep.subr.bf16.mxu0 %v2565_v15 }
0x1f19   :  { %v1667_v30 = vpop.f32.mrb[24].mxu0 }
0x1f1a   :  { %v1673_v33 = vadd.f32 %v1667_v30, %v2982_v24  ;;  %v2353_v0 = vpop.f32.mrb[25].mxu0 }
0x1f1b   :  { %v1670_v34 = vpop.f32.mrb[26].mxu0 }
0x1f1c   :  { %2525 = vtanh.f32 %v1673_v33  ;;  %v2354_v35 = vpop.f32.mrb[27].mxu0  ;;  %v2106_v37 = vmul.f32 -1.442695, %v1673_v33 }
0x1f1e   :  { %2527 = vpow2.f32 %v2106_v37 }
0x1f26   :  { %v2526_v36 = vpop.eup %2525 }
0x1f27   :  { %1683 = vrot.lane.b32.xlu0 %v2526_v36, %s2569_s1 }
0x1f28   :  { %v2528_v38 = vpop.eup %2527 }
0x1f29   :  { %v1677_v39 = vadd.f32 1.0, %v2528_v38 }
0x1f2b   :  { %2529 = vrcp.f32 %v1677_v39 }
0x1f35   :  { %v2530_v40 = vpop.eup %2529 }
0x1f36   :  { %v1681_v45 = vmul.f32 %v2530_v40, %v1619_v23 }
0x1f99   :  { %v1684_v43 = vpop.permute.xlu0 %1683 }
0x1f9a   :  { %v1686_v44 = vmul.f32 %v2530_v40, %v1684_v43 }
0x1f9c   :  { %1688 = vrot.lane.b32.xlu1 %v1686_v44, %s2572_s3 }
0x200e   :  { %v1689_v47 = vpop.permute.xlu1 %1688 }
0x200f   :  { %v1691_v24 = vadd.f32 %v1689_v47, %v1681_v45 }
0x2011   :  { %2531 = vtanh.f32 %v1691_v24 }
0x201b   :  { %v2532_v48 = vpop.eup %2531 }
0x201c   :  { %1694 = vrot.lane.b32.xlu0 %v2532_v48, %s2569_s1 }
0x208e   :  { %v1695_v49 = vpop.permute.xlu0 %1694 }
0x208f   :  { %v3046_v53 = vmul.f32 %v2530_v40, %v1695_v49 }
0x2091   :  { %v1698_v54 = vpack.c.bf16 %v3046_v53, %v3046_v53 }
0x2093   :  { %1700 = vrot.lane.b32.xlu1 %v1698_v54, %s2572_s3 }
0x2105   :  { %v1701_v55 = vpop.permute.xlu1 %1700 }
0x2106   :  { %2360 = vmatmul.mubr.msk.bf16.vlgmr.msra.gmra.mrb[40].mxu1 %vm22_vm0, %v1701_v55 }
0x2107   :  { %2372 = vmatpush3.bf16.msra.mxu1 %v2943_v41  ;;  %2375 = vmatprep.mubr.msk.bf16.mxu1 %vm2566_vm1, %v2565_v15 }
0x2108   :  { %2373 = vmatprep.subr.bf16.mxu1 %v2565_v15 }
0x210b   :  { %2374 = vmatpush3.bf16.msra.mxu1 %v2950_v42 }
0x21d9   :  { %v1739_v58 = vpop.f32.mrb[40].mxu1 }
0x21da   :  { %v1745_v59 = vadd.f32 %v1739_v58, %v2985_v26  ;;  %v2361_v60 = vpop.f32.mrb[41].mxu1 }
0x21db   :  { %v1742_v61 = vpop.f32.mrb[42].mxu1 }
0x21dc   :  { %2533 = vtanh.f32 %v1745_v59  ;;  %v2362_v62 = vpop.f32.mrb[43].mxu1  ;;  %v2108_v1 = vmul.f32 -1.442695, %v1745_v59 }
0x21de   :  { %2535 = vpow2.f32 %v2108_v1 }
0x21e6   :  { %v2534_v63 = vpop.eup %2533 }
0x21e7   :  { %1755 = vrot.lane.b32.xlu0 %v2534_v63, %s2569_s1 }
0x21e8   :  { %v2536_v2 = vpop.eup %2535 }
0x21e9   :  { %v1749_v3 = vadd.f32 1.0, %v2536_v2 }
0x21eb   :  { %2537 = vrcp.f32 %v1749_v3 }
0x21f5   :  { %v2538_v4 = vpop.eup %2537 }
0x21f6   :  { %v1753_v7 = vmul.f32 %v2538_v4, %v1691_v24 }
0x2259   :  { %v1756_v5 = vpop.permute.xlu0 %1755 }
0x225a   :  { %v1758_v6 = vmul.f32 %v2538_v4, %v1756_v5 }
0x225c   :  { %1760 = vrot.lane.b32.xlu1 %v1758_v6, %s2572_s3 }
0x22ce   :  { %v1761_v9 = vpop.permute.xlu1 %1760 }
0x22cf   :  { %v1763_v26 = vadd.f32 %v1761_v9, %v1753_v7 }
0x22d1   :  { %2539 = vtanh.f32 %v1763_v26 }
0x22db   :  { %v2540_v10 = vpop.eup %2539 }
0x22dc   :  { %1766 = vrot.lane.b32.xlu0 %v2540_v10, %s2569_s1 }
0x234e   :  { %v1767_v11 = vpop.permute.xlu0 %1766 }
0x234f   :  { %v3061_v12 = vmul.f32 %v2538_v4, %v1767_v11 }
0x2351   :  { %v1770_v13 = vpack.c.bf16 %v3061_v12, %v3061_v12 }
0x2353   :  { %1772 = vrot.lane.b32.xlu1 %v1770_v13, %s2572_s3 }
0x23c5   :  { %v1773_v14 = vpop.permute.xlu1 %1772 }
0x23c6   :  { %2368 = vmatmul.mubr.msk.bf16.vlgmr.msra.gmra.mrb[28].mxu0 %vm22_vm0, %v1773_v14 }
0x23c7   :  { %2380 = vmatpush3.bf16.msra.mxu0 %v2943_v41  ;;  %2383 = vmatprep.mubr.msk.bf16.mxu0 %vm2566_vm1, %v2565_v15 }
0x23c8   :  { %2381 = vmatprep.subr.bf16.mxu0 %v2565_v15 }
0x23cb   :  { %2382 = vmatpush3.bf16.msra.mxu0 %v2950_v42 }
0x2499   :  { %v1811_v16 = vpop.f32.mrb[28].mxu0 }
0x249a   :  { %v1817_v17 = vadd.f32 %v1811_v16, %v2988_v27  ;;  %v2369_v31 = vpop.f32.mrb[29].mxu0 }
0x249b   :  { %v1814_v32 = vpop.f32.mrb[30].mxu0 }
0x249c   :  { %2541 = vtanh.f32 %v1817_v17  ;;  %v2370_v18 = vpop.f32.mrb[31].mxu0  ;;  %v2110_v20 = vmul.f32 -1.442695, %v1817_v17 }
0x249e   :  { %2543 = vpow2.f32 %v2110_v20 }
0x24a6   :  { %v2542_v19 = vpop.eup %2541 }
0x24a7   :  { %1827 = vrot.lane.b32.xlu0 %v2542_v19, %s2569_s1 }
0x24a8   :  { %v2544_v41 = vpop.eup %2543 }
0x24a9   :  { %v1821_v21 = vadd.f32 1.0, %v2544_v41 }
0x24ab   :  { %2545 = vrcp.f32 %v1821_v21 }
0x24b5   :  { %v2546_v22 = vpop.eup %2545 }
0x24b6   :  { %v1825_v42 = vmul.f32 %v2546_v22, %v1763_v26 }
0x2519   :  { %v1828_v57 = vpop.permute.xlu0 %1827 }
0x251a   :  { %v1830_v15 = vmul.f32 %v2546_v22, %v1828_v57 }
0x251c   :  { %1832 = vrot.lane.b32.xlu1 %v1830_v15, %s2572_s3 }
0x258e   :  { %v1833_v23 = vpop.permute.xlu1 %1832 }
0x258f   :  { %v1835_v27 = vadd.f32 %v1833_v23, %v1825_v42 }
0x2591   :  { %2547 = vtanh.f32 %v1835_v27 }
0x259b   :  { %v2548_v51 = vpop.eup %2547 }
0x259c   :  { %1838 = vrot.lane.b32.xlu0 %v2548_v51, %s2569_s1 }
0x260e   :  { %v1839_v25 = vpop.permute.xlu0 %1838 }
0x260f   :  { %v1841_v56 = vmul.f32 %v2546_v22, %v1839_v25 }
0x2611   :  { %v1842_v29 = vpack.c.bf16 %v1841_v56, %v1841_v56 }
0x2613   :  { %1844 = vrot.lane.b32.xlu1 %v1842_v29, %s2572_s3 }
0x2685   :  { %v1845_v30 = vpop.permute.xlu1 %1844 }
0x2686   :  { %2376 = vmatmul.mubr.msk.bf16.vlgmr.msra.gmra.mrb[44].mxu1 %vm22_vm0, %v1845_v30 }
0x2759   :  { %v1883_v33 = vpop.f32.mrb[44].mxu1 }
0x275a   :  { %v1889_v0 = vadd.f32 %v1883_v33, %v2991_v28  ;;  %v2377_v34 = vpop.f32.mrb[45].mxu1 }
0x275b   :  { %v1886_v35 = vpop.f32.mrb[46].mxu1 }
0x275c   :  { %2549 = vtanh.f32 %v1889_v0  ;;  %v2378_v36 = vpop.f32.mrb[47].mxu1  ;;  %v2112_v38 = vmul.f32 -1.442695, %v1889_v0 }
0x275e   :  { %2551 = vpow2.f32 %v2112_v38 }
0x2766   :  { %v2550_v37 = vpop.eup %2549 }
0x2767   :  { %1899 = vrot.lane.b32.xlu0 %v2550_v37, %s2569_s1 }
0x2768   :  { %v2552_v39 = vpop.eup %2551 }
0x2769   :  { %v1893_v40 = vadd.f32 1.0, %v2552_v39 }
0x276b   :  { %2553 = vrcp.f32 %v1893_v40 }
0x2775   :  { %v2554_v43 = vpop.eup %2553 }
0x2776   :  { %v1897_v47 = vmul.f32 %v2554_v43, %v1835_v27 }
0x27d9   :  { %v1900_v44 = vpop.permute.xlu0 %1899 }
0x27da   :  { %v1902_v45 = vmul.f32 %v2554_v43, %v1900_v44 }
0x27dc   :  { %1904 = vrot.lane.b32.xlu1 %v1902_v45, %s2572_s3 }
0x284e   :  { %v1905_v24 = vpop.permute.xlu1 %1904 }
0x284f   :  { %v1907_v28 = vadd.f32 %v1905_v24, %v1897_v47 }
0x2851   :  { %2555 = vtanh.f32 %v1907_v28 }
0x285b   :  { %v2556_v48 = vpop.eup %2555 }
0x285c   :  { %1910 = vrot.lane.b32.xlu0 %v2556_v48, %s2569_s1 }
0x28ce   :  { %v1911_v49 = vpop.permute.xlu0 %1910 }
0x28cf   :  { %v1913_v54 = vmul.f32 %v2554_v43, %v1911_v49 }
0x28d1   :  { %v1914_v55 = vpack.c.bf16 %v1913_v54, %v1913_v54 }
0x28d3   :  { %1916 = vrot.lane.b32.xlu1 %v1914_v55, %s2572_s3 }
0x2945   :  { %v1917_v58 = vpop.permute.xlu1 %1916 }
0x2946   :  { %2384 = vmatmul.mubr.msk.bf16.vlgmr.msra.gmra.mrb[32].mxu0 %vm22_vm0, %v1917_v58 }
0x2a19   :  { %v1955_v59 = vpop.f32.mrb[32].mxu0 }
0x2a1a   :  { %v1961_v60 = vadd.f32 %v1955_v59, %v2994_v50  ;;  %v2385_v61 = vpop.f32.mrb[33].mxu0 }
0x2a1b   :  { %v1958_v62 = vpop.f32.mrb[34].mxu0 }
0x2a1c   :  { %2557 = vtanh.f32 %v1961_v60  ;;  %v2386_v63 = vpop.f32.mrb[35].mxu0  ;;  %v2114_v2 = vmul.f32 -1.442695, %v1961_v60 }
0x2a1e   :  { %2559 = vpow2.f32 %v2114_v2 }
0x2a26   :  { %v2558_v1 = vpop.eup %2557 }
0x2a27   :  { %1971 = vrot.lane.b32.xlu0 %v2558_v1, %s2569_s1 }
0x2a28   :  { %v2560_v3 = vpop.eup %2559 }
0x2a29   :  { %v1965_v4 = vadd.f32 1.0, %v2560_v3 }
0x2a2b   :  { %1991 = vrot.lane.b32.xlu0 %v3014_v8, %s2569_s1  ;;  %2561 = vrcp.f32 %v1965_v4 }
0x2a2f   :  { %2003 = vrot.lane.b32.xlu0 %v1841_v56, %s2569_s1 }
0x2a35   :  { %v2562_v5 = vpop.eup %2561 }
0x2a36   :  { %v1969_v8 = vmul.f32 %v2562_v5, %v1907_v28 }
0x2a99   :  { %v1972_v6 = vpop.permute.xlu0 %1971 }
0x2a9a   :  { %v1974_v50 = vmul.f32 %v2562_v5, %v1972_v6 }
0x2a9c   :  { %1976 = vrot.lane.b32.xlu1 %v1974_v50, %s2572_s3 }
0x2a9d   :  { %v1992_v11 = vpop.permute.xlu0 %1991 }
0x2aa0   :  { %1987 = vrot.lane.b32.xlu1 %v2999_v46, %s2572_s3 }
0x2aa1   :  { %v2004_v14 = vpop.permute.xlu0 %2003 }
0x2aa4   :  { %1999 = vrot.lane.b32.xlu1 %v3061_v12, %s2572_s3 }
0x2aa8   :  { %1995 = vrot.lane.b32.xlu1 %v3030_v52, %s2568_s29 }
0x2b0e   :  { %v1977_v7 = vpop.permute.xlu1 %1976 }
0x2b0f   :  { %v1979_v9 = vadd.f32 %v1977_v7, %v1969_v8 }
0x2b11   :  { %2563 = vtanh.f32 %v1979_v9 }
0x2b12   :  { %v1988_v10 = vpop.permute.xlu1 %1987 }
0x2b13   :  { %v2010_v12 = vsel %vm22_vm0, %v1988_v10, %v1992_v11 }
0x2b16   :  { %v2000_v13 = vpop.permute.xlu1 %1999 }
0x2b17   :  { %v2015_v17 = vsel %vm22_vm0, %v2000_v13, %v2004_v14 }
0x2b1a   :  { %v1996_v46 = vpop.permute.xlu1 %1995 }
0x2b1b   :  { %v2564_v26 = vpop.eup %2563  ;;  %v2012_v52 = vsel %vm2011_vm4, %v2010_v12, %v1996_v46 }
0x2b1c   :  { %1982 = vrot.lane.b32.xlu0 %v2564_v26, %s2569_s1  ;;  %v2014_v19 = vsel %vm2013_vm5, %v2012_v52, %v3046_v53 }
0x2b20   :  { %2007 = vrot.lane.b32.xlu0 %v1913_v54, %s2568_s29 }
0x2b8e   :  { %v1983_v16 = vpop.permute.xlu0 %1982 }
0x2b8f   :  { %v1985_v31 = vmul.f32 %v2562_v5, %v1983_v16 }
0x2b92   :  { %v2008_v32 = vpop.permute.xlu0 %2007 }
0x2b93   :  { %v2016_v18 = vsel %vm2011_vm4, %v2015_v17, %v2008_v32 }
0x2b94   :  { %v2017_v20 = vsel %vm2013_vm5, %v2016_v18, %v1985_v31 }
0x2b95   :  { %v2020_v41 = vcombine.low %v2014_v19, %v2017_v20 }
0x2b97   :  { %2115 = vst.sshfl [vmem:[%s3108_s4] sm:$0x33 pattern:$0x76325410] %v2020_v41 }

</bundles_post_ra>
